<compile_context>
chip_gen: v6e
topology: v6e:2x2x1
jax: 0.10.0
libtpu: 0.0.40
codegen_flags: <defaults>
</compile_context>

<pallas_src>
import numpy as np
import jax
import jax.numpy as jnp
from jax import lax
from jax.experimental import pallas as pl
from jax.experimental.pallas import tpu as pltpu


def _lstm_rater_kernel(xproj_ref, mask_ref, whh1_ref, w2_ref, b2_ref,
                       ln_g_ref, ln_b_ref, fc_w_ref, fc_b_ref, o_ref):
    S, B, G = xproj_ref.shape            # G = 4H
    H = whh1_ref.shape[0]

    whh1 = whh1_ref[...]                 # (H, 4H)  layer-1 recurrent weights
    w2 = w2_ref[...]                     # (2H, 4H) fused [W_ih_l1; W_hh_l1]
    b2 = jnp.broadcast_to(b2_ref[...], (B, G))   # broadcast hoisted out of loop

    def gates_to_hc(gates, c):
        # Two EUP pushes over the full 128-lane gate tile, then static slices.
        sig = jax.nn.sigmoid(gates)
        th = jnp.tanh(gates)
        i = sig[:, 0 * H:1 * H]
        f = sig[:, 1 * H:2 * H]
        g = th[:, 2 * H:3 * H]
        o = sig[:, 3 * H:4 * H]
        c_new = f * c + i * g
        h_new = o * jnp.tanh(c_new)
        return h_new, c_new

    z = jnp.zeros((B, H), jnp.float32)
    h1, c1, h2, c2 = z, z, z, z

    # Fully-unrolled serial recurrence (static trip count, static indices).
    for t in range(S):
        keep = mask_ref[t] > 0.0                    # (B, H) valid-step mask

        # Layer 1: input projection (incl. both biases) was precomputed, so
        # only one h-dependent dot sits on the serial chain.
        g1 = xproj_ref[t] + jnp.dot(h1, whh1, preferred_element_type=jnp.float32)
        h1n, c1n = gates_to_hc(g1, c1)
        h1 = jnp.where(keep, h1n, h1)               # freeze past seq end
        c1 = jnp.where(keep, c1n, c1)

        # Layer 2: single fused dot over concatenated [h1, h2].
        x2 = jnp.concatenate([h1, h2], axis=-1)     # (B, 2H)
        g2 = jnp.dot(x2, w2, preferred_element_type=jnp.float32) + b2
        h2n, c2n = gates_to_hc(g2, c2)
        h2 = jnp.where(keep, h2n, h2)
        c2 = jnp.where(keep, c2n, c2)

    # out_fc: LayerNorm(embed_ch) -> ReLU -> Linear(embed_ch, out_ch).
    h_last = h2                                     # == _h[-1]
    mean = jnp.mean(h_last, axis=-1, keepdims=True)
    var = jnp.mean((h_last - mean) ** 2, axis=-1, keepdims=True)
    hn = (h_last - mean) * lax.rsqrt(var + 1e-5)
    hn = hn * ln_g_ref[...] + ln_b_ref[...]
    hn = jnp.maximum(hn, 0.0)
    o_ref[...] = (jnp.dot(hn, fc_w_ref[...], preferred_element_type=jnp.float32)
                  + fc_b_ref[...])


def lstm_rater_forward(x, seq_length, p):
    """x: (B, in_ch, S) float32, seq_length: (B,) int32, p: param dict."""
    B, C, S = x.shape
    H = p['w_hh_l0'].shape[1]
    out_ch = p['fc_w'].shape[0]

    x_tm = jnp.transpose(x, (2, 0, 1)).astype(jnp.float32)          # (S, B, C)

    # Hoisted layer-1 input projection: one batched matmul over all timesteps,
    # layer-0 biases (b_ih + b_hh) folded in.
    b1 = (p['b_ih_l0'] + p['b_hh_l0']).reshape(1, 1, 4 * H)
    xproj = jnp.einsum('sbc,cg->sbg', x_tm,
                       p['w_ih_l0'].T.astype(jnp.float32)) + b1     # (S, B, 4H)

    # Packed-sequence keep-mask, precomputed once (1.0 while t < length).
    mask = (jnp.arange(S)[:, None, None]
            < seq_length.reshape(1, B, 1).astype(jnp.int32)).astype(jnp.float32)
    mask = jnp.broadcast_to(mask, (S, B, H))                        # (S, B, H)

    # Layer-2 weights stacked for the single fused per-step dot on [h1, h2].
    w2 = jnp.concatenate([p['w_ih_l1'].T, p['w_hh_l1'].T], axis=0)  # (2H, 4H)
    b2 = (p['b_ih_l1'] + p['b_hh_l1']).reshape(1, 4 * H)

    args = (
        xproj, mask,
        p['w_hh_l0'].T,                                             # (H, 4H)
        w2, b2,
        p['ln_g'].reshape(1, H), p['ln_b'].reshape(1, H),
        p['fc_w'].T, p['fc_b'].reshape(1, out_ch),
    )
    vmem = pl.BlockSpec(memory_space=pltpu.MemorySpace.VMEM)
    # At production shapes: grid over batch tiles (dimension_semantics=
    # ("parallel",)) for v7x's two TensorCores, and time-chunked BlockSpecs on
    # xproj/mask to respect v7x's smaller VMEM. Unnecessary at demo shapes.
    return pl.pallas_call(
        _lstm_rater_kernel,
        out_shape=jax.ShapeDtypeStruct((B, out_ch), jnp.float32),
        in_specs=[vmem] * len(args),
        out_specs=vmem,
    )(*args)


def ref_forward(x, seq_length, p):
    """Pure-JAX reference replicating PyTorch packed 2-layer LSTM + out_fc."""
    B, C, S = x.shape
    xs = jnp.transpose(x, (0, 2, 1))                                # (B, S, C)
    H = p['w_hh_l0'].shape[1]

    def cell(x_t, h, c, wih, whh, bih, bhh):
        gates = x_t @ wih.T + bih + h @ whh.T + bhh
        i, f, g, o = jnp.split(gates, 4, axis=-1)
        i, f, o = jax.nn.sigmoid(i), jax.nn.sigmoid(f), jax.nn.sigmoid(o)
        g = jnp.tanh(g)
        c = f * c + i * g
        return o * jnp.tanh(c), c

    h1 = c1 = h2 = c2 = jnp.zeros((B, H), jnp.float32)
    for t in range(S):
        mask = (t < seq_length).reshape(B, 1)
        h1n, c1n = cell(xs[:, t, :], h1, c1,
                        p['w_ih_l0'], p['w_hh_l0'], p['b_ih_l0'], p['b_hh_l0'])
        h1 = jnp.where(mask, h1n, h1)
        c1 = jnp.where(mask, c1n, c1)
        h2n, c2n = cell(h1, h2, c2,
                        p['w_ih_l1'], p['w_hh_l1'], p['b_ih_l1'], p['b_hh_l1'])
        h2 = jnp.where(mask, h2n, h2)
        c2 = jnp.where(mask, c2n, c2)

    mean = h2.mean(-1, keepdims=True)
    var = ((h2 - mean) ** 2).mean(-1, keepdims=True)
    hn = (h2 - mean) / jnp.sqrt(var + 1e-5) * p['ln_g'] + p['ln_b']
    hn = jnp.maximum(hn, 0.0)
    return hn @ p['fc_w'].T + p['fc_b']


if __name__ == "__main__":
    # Small shapes consistent with LSTM_rater(in_ch=4, embed_ch=32, out_ch=2)
    B, C, S = 2, 4, 8          # batch, in_ch, num_slice
    H, out_ch = 32, 2          # embed_ch, out_ch

    key = jax.random.PRNGKey(0)
    keys = jax.random.split(key, 16)
    scale = 1.0 / np.sqrt(H)

    def u(k, shape):
        return jax.random.uniform(k, shape, jnp.float32, -scale, scale)

    params = {
        'w_ih_l0': u(keys[0], (4 * H, C)),
        'w_hh_l0': u(keys[1], (4 * H, H)),
        'b_ih_l0': u(keys[2], (4 * H,)),
        'b_hh_l0': u(keys[3], (4 * H,)),
        'w_ih_l1': u(keys[4], (4 * H, H)),
        'w_hh_l1': u(keys[5], (4 * H, H)),
        'b_ih_l1': u(keys[6], (4 * H,)),
        'b_hh_l1': u(keys[7], (4 * H,)),
        'ln_g':    1.0 + 0.1 * u(keys[8], (H,)),
        'ln_b':    0.1 * u(keys[9], (H,)),
        'fc_w':    u(keys[10], (out_ch, H)),
        'fc_b':    u(keys[11], (out_ch,)),
    }

    x = jax.random.normal(keys[12], (B, C, S), jnp.float32)
    seq_length = jnp.array([6, 8], jnp.int32)   # variable-length sequences

    out = lstm_rater_forward(x, seq_length, params)
    out = jax.block_until_ready(out)
    assert out.shape == (B, out_ch)

    ref = ref_forward(x, seq_length, params)
    np.testing.assert_allclose(np.asarray(out), np.asarray(ref),
                               rtol=1e-4, atol=1e-4)
    print("KERNEL_OK")
</pallas_src>

<mosaic_0001>
module attributes {stable_mosaic.version = 11 : i64} {
  func.func @_lstm_rater_kernel(%arg0: memref<8x2x128xf32, #tpu.memory_space<vmem>>, %arg1: memref<8x2x32xf32, #tpu.memory_space<vmem>>, %arg2: memref<32x128xf32, #tpu.memory_space<vmem>>, %arg3: memref<64x128xf32, #tpu.memory_space<vmem>>, %arg4: memref<1x128xf32, #tpu.memory_space<vmem>>, %arg5: memref<1x32xf32, #tpu.memory_space<vmem>>, %arg6: memref<1x32xf32, #tpu.memory_space<vmem>>, %arg7: memref<32x2xf32, #tpu.memory_space<vmem>>, %arg8: memref<1x2xf32, #tpu.memory_space<vmem>>, %arg9: memref<2x2xf32, #tpu.memory_space<vmem>>) attributes {dimension_semantics = [], scalar_prefetch = 0 : i64, scratch_operands = 0 : i64, tpu.core_type = #tpu.core_type<tc>} {
    %c0 = arith.constant 0 : index
    %c0_0 = arith.constant 0 : index
    %0 = vector.load %arg2[%c0, %c0_0] : memref<32x128xf32, #tpu.memory_space<vmem>>, vector<32x128xf32>
    %c0_1 = arith.constant 0 : index
    %c0_2 = arith.constant 0 : index
    %1 = vector.load %arg3[%c0_1, %c0_2] : memref<64x128xf32, #tpu.memory_space<vmem>>, vector<64x128xf32>
    %c0_3 = arith.constant 0 : index
    %c0_4 = arith.constant 0 : index
    %2 = vector.load %arg4[%c0_3, %c0_4] : memref<1x128xf32, #tpu.memory_space<vmem>>, vector<1x128xf32>
    %3 = vector.shape_cast %2 : vector<1x128xf32> to vector<1x128xf32>
    %4 = vector.broadcast %3 : vector<1x128xf32> to vector<2x128xf32>
    %cst = arith.constant 0.000000e+00 : f32
    %5 = vector.broadcast %cst : f32 to vector<2x32xf32>
    %c0_5 = arith.constant 0 : index
    %c0_6 = arith.constant 0 : index
    %c0_7 = arith.constant 0 : index
    %6 = vector.load %arg1[%c0_5, %c0_6, %c0_7] : memref<8x2x32xf32, #tpu.memory_space<vmem>>, vector<1x2x32xf32>
    %7 = vector.shape_cast %6 : vector<1x2x32xf32> to vector<2x32xf32>
    %cst_8 = arith.constant 0.000000e+00 : f32
    %8 = vector.broadcast %cst_8 : f32 to vector<2x32xf32>
    %9 = arith.cmpf ogt, %7, %8 : vector<2x32xf32>
    %c0_9 = arith.constant 0 : index
    %c0_10 = arith.constant 0 : index
    %c0_11 = arith.constant 0 : index
    %10 = vector.load %arg0[%c0_9, %c0_10, %c0_11] : memref<8x2x128xf32, #tpu.memory_space<vmem>>, vector<1x2x128xf32>
    %11 = vector.shape_cast %10 : vector<1x2x128xf32> to vector<2x128xf32>
    %cst_12 = arith.constant dense<0.000000e+00> : vector<2x128xf32>
    %12 = tpu.matmul %5, %0, %cst_12 {dimension_numbers = #tpu.dot_dimension_numbers<[1], [0], [0], [1], [0, 0, 1, 1], [], []>} : vector<2x32xf32>, vector<32x128xf32>, vector<2x128xf32> -> vector<2x128xf32>
    %13 = arith.addf %11, %12 : vector<2x128xf32>
    %14 = arith.negf %13 : vector<2x128xf32>
    %15 = math.exp %14 : vector<2x128xf32>
    %cst_13 = arith.constant 1.000000e+00 : f32
    %16 = vector.broadcast %cst_13 : f32 to vector<2x128xf32>
    %17 = arith.addf %16, %15 : vector<2x128xf32>
    %18 = arith.divf %16, %17 : vector<2x128xf32>
    %19 = math.tanh %13 : vector<2x128xf32>
    %20 = vector.extract_strided_slice %18 {offsets = [0, 0], sizes = [2, 32], strides = [1, 1]} : vector<2x128xf32> to vector<2x32xf32>
    %21 = vector.extract_strided_slice %18 {offsets = [0, 32], sizes = [2, 32], strides = [1, 1]} : vector<2x128xf32> to vector<2x32xf32>
    %22 = vector.extract_strided_slice %19 {offsets = [0, 64], sizes = [2, 32], strides = [1, 1]} : vector<2x128xf32> to vector<2x32xf32>
    %23 = vector.extract_strided_slice %18 {offsets = [0, 96], sizes = [2, 32], strides = [1, 1]} : vector<2x128xf32> to vector<2x32xf32>
    %24 = arith.mulf %21, %5 : vector<2x32xf32>
    %25 = arith.mulf %20, %22 : vector<2x32xf32>
    %26 = arith.addf %24, %25 : vector<2x32xf32>
    %27 = math.tanh %26 : vector<2x32xf32>
    %28 = arith.mulf %23, %27 : vector<2x32xf32>
    %29 = arith.select %9, %28, %5 : vector<2x32xi1>, vector<2x32xf32>
    %30 = arith.select %9, %26, %5 : vector<2x32xi1>, vector<2x32xf32>
    %31 = tpu.concatenate %29, %5 in 1 : vector<2x32xf32>, vector<2x32xf32> -> vector<2x64xf32>
    %cst_14 = arith.constant dense<0.000000e+00> : vector<2x128xf32>
    %32 = tpu.matmul %31, %1, %cst_14 {dimension_numbers = #tpu.dot_dimension_numbers<[1], [0], [0], [1], [0, 0, 1, 1], [], []>} : vector<2x64xf32>, vector<64x128xf32>, vector<2x128xf32> -> vector<2x128xf32>
    %33 = arith.addf %32, %4 : vector<2x128xf32>
    %34 = arith.negf %33 : vector<2x128xf32>
    %35 = math.exp %34 : vector<2x128xf32>
    %cst_15 = arith.constant 1.000000e+00 : f32
    %36 = vector.broadcast %cst_15 : f32 to vector<2x128xf32>
    %37 = arith.addf %36, %35 : vector<2x128xf32>
    %38 = arith.divf %36, %37 : vector<2x128xf32>
    %39 = math.tanh %33 : vector<2x128xf32>
    %40 = vector.extract_strided_slice %38 {offsets = [0, 0], sizes = [2, 32], strides = [1, 1]} : vector<2x128xf32> to vector<2x32xf32>
    %41 = vector.extract_strided_slice %38 {offsets = [0, 32], sizes = [2, 32], strides = [1, 1]} : vector<2x128xf32> to vector<2x32xf32>
    %42 = vector.extract_strided_slice %39 {offsets = [0, 64], sizes = [2, 32], strides = [1, 1]} : vector<2x128xf32> to vector<2x32xf32>
    %43 = vector.extract_strided_slice %38 {offsets = [0, 96], sizes = [2, 32], strides = [1, 1]} : vector<2x128xf32> to vector<2x32xf32>
    %44 = arith.mulf %41, %5 : vector<2x32xf32>
    %45 = arith.mulf %40, %42 : vector<2x32xf32>
    %46 = arith.addf %44, %45 : vector<2x32xf32>
    %47 = math.tanh %46 : vector<2x32xf32>
    %48 = arith.mulf %43, %47 : vector<2x32xf32>
    %49 = arith.select %9, %48, %5 : vector<2x32xi1>, vector<2x32xf32>
    %50 = arith.select %9, %46, %5 : vector<2x32xi1>, vector<2x32xf32>
    %c1 = arith.constant 1 : index
    %c0_16 = arith.constant 0 : index
    %c0_17 = arith.constant 0 : index
    %51 = vector.load %arg1[%c1, %c0_16, %c0_17] : memref<8x2x32xf32, #tpu.memory_space<vmem>>, vector<1x2x32xf32>
    %52 = vector.shape_cast %51 : vector<1x2x32xf32> to vector<2x32xf32>
    %cst_18 = arith.constant 0.000000e+00 : f32
    %53 = vector.broadcast %cst_18 : f32 to vector<2x32xf32>
    %54 = arith.cmpf ogt, %52, %53 : vector<2x32xf32>
    %c1_19 = arith.constant 1 : index
    %c0_20 = arith.constant 0 : index
    %c0_21 = arith.constant 0 : index
    %55 = vector.load %arg0[%c1_19, %c0_20, %c0_21] : memref<8x2x128xf32, #tpu.memory_space<vmem>>, vector<1x2x128xf32>
    %56 = vector.shape_cast %55 : vector<1x2x128xf32> to vector<2x128xf32>
    %cst_22 = arith.constant dense<0.000000e+00> : vector<2x128xf32>
    %57 = tpu.matmul %29, %0, %cst_22 {dimension_numbers = #tpu.dot_dimension_numbers<[1], [0], [0], [1], [0, 0, 1, 1], [], []>} : vector<2x32xf32>, vector<32x128xf32>, vector<2x128xf32> -> vector<2x128xf32>
    %58 = arith.addf %56, %57 : vector<2x128xf32>
    %59 = arith.negf %58 : vector<2x128xf32>
    %60 = math.exp %59 : vector<2x128xf32>
    %cst_23 = arith.constant 1.000000e+00 : f32
    %61 = vector.broadcast %cst_23 : f32 to vector<2x128xf32>
    %62 = arith.addf %61, %60 : vector<2x128xf32>
    %63 = arith.divf %61, %62 : vector<2x128xf32>
    %64 = math.tanh %58 : vector<2x128xf32>
    %65 = vector.extract_strided_slice %63 {offsets = [0, 0], sizes = [2, 32], strides = [1, 1]} : vector<2x128xf32> to vector<2x32xf32>
    %66 = vector.extract_strided_slice %63 {offsets = [0, 32], sizes = [2, 32], strides = [1, 1]} : vector<2x128xf32> to vector<2x32xf32>
    %67 = vector.extract_strided_slice %64 {offsets = [0, 64], sizes = [2, 32], strides = [1, 1]} : vector<2x128xf32> to vector<2x32xf32>
    %68 = vector.extract_strided_slice %63 {offsets = [0, 96], sizes = [2, 32], strides = [1, 1]} : vector<2x128xf32> to vector<2x32xf32>
    %69 = arith.mulf %66, %30 : vector<2x32xf32>
    %70 = arith.mulf %65, %67 : vector<2x32xf32>
    %71 = arith.addf %69, %70 : vector<2x32xf32>
    %72 = math.tanh %71 : vector<2x32xf32>
    %73 = arith.mulf %68, %72 : vector<2x32xf32>
    %74 = arith.select %54, %73, %29 : vector<2x32xi1>, vector<2x32xf32>
    %75 = arith.select %54, %71, %30 : vector<2x32xi1>, vector<2x32xf32>
    %76 = tpu.concatenate %74, %49 in 1 : vector<2x32xf32>, vector<2x32xf32> -> vector<2x64xf32>
    %cst_24 = arith.constant dense<0.000000e+00> : vector<2x128xf32>
    %77 = tpu.matmul %76, %1, %cst_24 {dimension_numbers = #tpu.dot_dimension_numbers<[1], [0], [0], [1], [0, 0, 1, 1], [], []>} : vector<2x64xf32>, vector<64x128xf32>, vector<2x128xf32> -> vector<2x128xf32>
    %78 = arith.addf %77, %4 : vector<2x128xf32>
    %79 = arith.negf %78 : vector<2x128xf32>
    %80 = math.exp %79 : vector<2x128xf32>
    %cst_25 = arith.constant 1.000000e+00 : f32
    %81 = vector.broadcast %cst_25 : f32 to vector<2x128xf32>
    %82 = arith.addf %81, %80 : vector<2x128xf32>
    %83 = arith.divf %81, %82 : vector<2x128xf32>
    %84 = math.tanh %78 : vector<2x128xf32>
    %85 = vector.extract_strided_slice %83 {offsets = [0, 0], sizes = [2, 32], strides = [1, 1]} : vector<2x128xf32> to vector<2x32xf32>
    %86 = vector.extract_strided_slice %83 {offsets = [0, 32], sizes = [2, 32], strides = [1, 1]} : vector<2x128xf32> to vector<2x32xf32>
    %87 = vector.extract_strided_slice %84 {offsets = [0, 64], sizes = [2, 32], strides = [1, 1]} : vector<2x128xf32> to vector<2x32xf32>
    %88 = vector.extract_strided_slice %83 {offsets = [0, 96], sizes = [2, 32], strides = [1, 1]} : vector<2x128xf32> to vector<2x32xf32>
    %89 = arith.mulf %86, %50 : vector<2x32xf32>
    %90 = arith.mulf %85, %87 : vector<2x32xf32>
    %91 = arith.addf %89, %90 : vector<2x32xf32>
    %92 = math.tanh %91 : vector<2x32xf32>
    %93 = arith.mulf %88, %92 : vector<2x32xf32>
    %94 = arith.select %54, %93, %49 : vector<2x32xi1>, vector<2x32xf32>
    %95 = arith.select %54, %91, %50 : vector<2x32xi1>, vector<2x32xf32>
    %c2 = arith.constant 2 : index
    %c0_26 = arith.constant 0 : index
    %c0_27 = arith.constant 0 : index
    %96 = vector.load %arg1[%c2, %c0_26, %c0_27] : memref<8x2x32xf32, #tpu.memory_space<vmem>>, vector<1x2x32xf32>
    %97 = vector.shape_cast %96 : vector<1x2x32xf32> to vector<2x32xf32>
    %cst_28 = arith.constant 0.000000e+00 : f32
    %98 = vector.broadcast %cst_28 : f32 to vector<2x32xf32>
    %99 = arith.cmpf ogt, %97, %98 : vector<2x32xf32>
    %c2_29 = arith.constant 2 : index
    %c0_30 = arith.constant 0 : index
    %c0_31 = arith.constant 0 : index
    %100 = vector.load %arg0[%c2_29, %c0_30, %c0_31] : memref<8x2x128xf32, #tpu.memory_space<vmem>>, vector<1x2x128xf32>
    %101 = vector.shape_cast %100 : vector<1x2x128xf32> to vector<2x128xf32>
    %cst_32 = arith.constant dense<0.000000e+00> : vector<2x128xf32>
    %102 = tpu.matmul %74, %0, %cst_32 {dimension_numbers = #tpu.dot_dimension_numbers<[1], [0], [0], [1], [0, 0, 1, 1], [], []>} : vector<2x32xf32>, vector<32x128xf32>, vector<2x128xf32> -> vector<2x128xf32>
    %103 = arith.addf %101, %102 : vector<2x128xf32>
    %104 = arith.negf %103 : vector<2x128xf32>
    %105 = math.exp %104 : vector<2x128xf32>
    %cst_33 = arith.constant 1.000000e+00 : f32
    %106 = vector.broadcast %cst_33 : f32 to vector<2x128xf32>
    %107 = arith.addf %106, %105 : vector<2x128xf32>
    %108 = arith.divf %106, %107 : vector<2x128xf32>
    %109 = math.tanh %103 : vector<2x128xf32>
    %110 = vector.extract_strided_slice %108 {offsets = [0, 0], sizes = [2, 32], strides = [1, 1]} : vector<2x128xf32> to vector<2x32xf32>
    %111 = vector.extract_strided_slice %108 {offsets = [0, 32], sizes = [2, 32], strides = [1, 1]} : vector<2x128xf32> to vector<2x32xf32>
    %112 = vector.extract_strided_slice %109 {offsets = [0, 64], sizes = [2, 32], strides = [1, 1]} : vector<2x128xf32> to vector<2x32xf32>
    %113 = vector.extract_strided_slice %108 {offsets = [0, 96], sizes = [2, 32], strides = [1, 1]} : vector<2x128xf32> to vector<2x32xf32>
    %114 = arith.mulf %111, %75 : vector<2x32xf32>
    %115 = arith.mulf %110, %112 : vector<2x32xf32>
    %116 = arith.addf %114, %115 : vector<2x32xf32>
    %117 = math.tanh %116 : vector<2x32xf32>
    %118 = arith.mulf %113, %117 : vector<2x32xf32>
    %119 = arith.select %99, %118, %74 : vector<2x32xi1>, vector<2x32xf32>
    %120 = arith.select %99, %116, %75 : vector<2x32xi1>, vector<2x32xf32>
    %121 = tpu.concatenate %119, %94 in 1 : vector<2x32xf32>, vector<2x32xf32> -> vector<2x64xf32>
    %cst_34 = arith.constant dense<0.000000e+00> : vector<2x128xf32>
    %122 = tpu.matmul %121, %1, %cst_34 {dimension_numbers = #tpu.dot_dimension_numbers<[1], [0], [0], [1], [0, 0, 1, 1], [], []>} : vector<2x64xf32>, vector<64x128xf32>, vector<2x128xf32> -> vector<2x128xf32>
    %123 = arith.addf %122, %4 : vector<2x128xf32>
    %124 = arith.negf %123 : vector<2x128xf32>
    %125 = math.exp %124 : vector<2x128xf32>
    %cst_35 = arith.constant 1.000000e+00 : f32
    %126 = vector.broadcast %cst_35 : f32 to vector<2x128xf32>
    %127 = arith.addf %126, %125 : vector<2x128xf32>
    %128 = arith.divf %126, %127 : vector<2x128xf32>
    %129 = math.tanh %123 : vector<2x128xf32>
    %130 = vector.extract_strided_slice %128 {offsets = [0, 0], sizes = [2, 32], strides = [1, 1]} : vector<2x128xf32> to vector<2x32xf32>
    %131 = vector.extract_strided_slice %128 {offsets = [0, 32], sizes = [2, 32], strides = [1, 1]} : vector<2x128xf32> to vector<2x32xf32>
    %132 = vector.extract_strided_slice %129 {offsets = [0, 64], sizes = [2, 32], strides = [1, 1]} : vector<2x128xf32> to vector<2x32xf32>
    %133 = vector.extract_strided_slice %128 {offsets = [0, 96], sizes = [2, 32], strides = [1, 1]} : vector<2x128xf32> to vector<2x32xf32>
    %134 = arith.mulf %131, %95 : vector<2x32xf32>
    %135 = arith.mulf %130, %132 : vector<2x32xf32>
    %136 = arith.addf %134, %135 : vector<2x32xf32>
    %137 = math.tanh %136 : vector<2x32xf32>
    %138 = arith.mulf %133, %137 : vector<2x32xf32>
    %139 = arith.select %99, %138, %94 : vector<2x32xi1>, vector<2x32xf32>
    %140 = arith.select %99, %136, %95 : vector<2x32xi1>, vector<2x32xf32>
    %c3 = arith.constant 3 : index
    %c0_36 = arith.constant 0 : index
    %c0_37 = arith.constant 0 : index
    %141 = vector.load %arg1[%c3, %c0_36, %c0_37] : memref<8x2x32xf32, #tpu.memory_space<vmem>>, vector<1x2x32xf32>
    %142 = vector.shape_cast %141 : vector<1x2x32xf32> to vector<2x32xf32>
    %cst_38 = arith.constant 0.000000e+00 : f32
    %143 = vector.broadcast %cst_38 : f32 to vector<2x32xf32>
    %144 = arith.cmpf ogt, %142, %143 : vector<2x32xf32>
    %c3_39 = arith.constant 3 : index
    %c0_40 = arith.constant 0 : index
    %c0_41 = arith.constant 0 : index
    %145 = vector.load %arg0[%c3_39, %c0_40, %c0_41] : memref<8x2x128xf32, #tpu.memory_space<vmem>>, vector<1x2x128xf32>
    %146 = vector.shape_cast %145 : vector<1x2x128xf32> to vector<2x128xf32>
    %cst_42 = arith.constant dense<0.000000e+00> : vector<2x128xf32>
    %147 = tpu.matmul %119, %0, %cst_42 {dimension_numbers = #tpu.dot_dimension_numbers<[1], [0], [0], [1], [0, 0, 1, 1], [], []>} : vector<2x32xf32>, vector<32x128xf32>, vector<2x128xf32> -> vector<2x128xf32>
    %148 = arith.addf %146, %147 : vector<2x128xf32>
    %149 = arith.negf %148 : vector<2x128xf32>
    %150 = math.exp %149 : vector<2x128xf32>
    %cst_43 = arith.constant 1.000000e+00 : f32
    %151 = vector.broadcast %cst_43 : f32 to vector<2x128xf32>
    %152 = arith.addf %151, %150 : vector<2x128xf32>
    %153 = arith.divf %151, %152 : vector<2x128xf32>
    %154 = math.tanh %148 : vector<2x128xf32>
    %155 = vector.extract_strided_slice %153 {offsets = [0, 0], sizes = [2, 32], strides = [1, 1]} : vector<2x128xf32> to vector<2x32xf32>
    %156 = vector.extract_strided_slice %153 {offsets = [0, 32], sizes = [2, 32], strides = [1, 1]} : vector<2x128xf32> to vector<2x32xf32>
    %157 = vector.extract_strided_slice %154 {offsets = [0, 64], sizes = [2, 32], strides = [1, 1]} : vector<2x128xf32> to vector<2x32xf32>
    %158 = vector.extract_strided_slice %153 {offsets = [0, 96], sizes = [2, 32], strides = [1, 1]} : vector<2x128xf32> to vector<2x32xf32>
    %159 = arith.mulf %156, %120 : vector<2x32xf32>
    %160 = arith.mulf %155, %157 : vector<2x32xf32>
    %161 = arith.addf %159, %160 : vector<2x32xf32>
    %162 = math.tanh %161 : vector<2x32xf32>
    %163 = arith.mulf %158, %162 : vector<2x32xf32>
    %164 = arith.select %144, %163, %119 : vector<2x32xi1>, vector<2x32xf32>
    %165 = arith.select %144, %161, %120 : vector<2x32xi1>, vector<2x32xf32>
    %166 = tpu.concatenate %164, %139 in 1 : vector<2x32xf32>, vector<2x32xf32> -> vector<2x64xf32>
    %cst_44 = arith.constant dense<0.000000e+00> : vector<2x128xf32>
    %167 = tpu.matmul %166, %1, %cst_44 {dimension_numbers = #tpu.dot_dimension_numbers<[1], [0], [0], [1], [0, 0, 1, 1], [], []>} : vector<2x64xf32>, vector<64x128xf32>, vector<2x128xf32> -> vector<2x128xf32>
    %168 = arith.addf %167, %4 : vector<2x128xf32>
    %169 = arith.negf %168 : vector<2x128xf32>
    %170 = math.exp %169 : vector<2x128xf32>
    %cst_45 = arith.constant 1.000000e+00 : f32
    %171 = vector.broadcast %cst_45 : f32 to vector<2x128xf32>
    %172 = arith.addf %171, %170 : vector<2x128xf32>
    %173 = arith.divf %171, %172 : vector<2x128xf32>
    %174 = math.tanh %168 : vector<2x128xf32>
    %175 = vector.extract_strided_slice %173 {offsets = [0, 0], sizes = [2, 32], strides = [1, 1]} : vector<2x128xf32> to vector<2x32xf32>
    %176 = vector.extract_strided_slice %173 {offsets = [0, 32], sizes = [2, 32], strides = [1, 1]} : vector<2x128xf32> to vector<2x32xf32>
    %177 = vector.extract_strided_slice %174 {offsets = [0, 64], sizes = [2, 32], strides = [1, 1]} : vector<2x128xf32> to vector<2x32xf32>
    %178 = vector.extract_strided_slice %173 {offsets = [0, 96], sizes = [2, 32], strides = [1, 1]} : vector<2x128xf32> to vector<2x32xf32>
    %179 = arith.mulf %176, %140 : vector<2x32xf32>
    %180 = arith.mulf %175, %177 : vector<2x32xf32>
    %181 = arith.addf %179, %180 : vector<2x32xf32>
    %182 = math.tanh %181 : vector<2x32xf32>
    %183 = arith.mulf %178, %182 : vector<2x32xf32>
    %184 = arith.select %144, %183, %139 : vector<2x32xi1>, vector<2x32xf32>
    %185 = arith.select %144, %181, %140 : vector<2x32xi1>, vector<2x32xf32>
    %c4 = arith.constant 4 : index
    %c0_46 = arith.constant 0 : index
    %c0_47 = arith.constant 0 : index
    %186 = vector.load %arg1[%c4, %c0_46, %c0_47] : memref<8x2x32xf32, #tpu.memory_space<vmem>>, vector<1x2x32xf32>
    %187 = vector.shape_cast %186 : vector<1x2x32xf32> to vector<2x32xf32>
    %cst_48 = arith.constant 0.000000e+00 : f32
    %188 = vector.broadcast %cst_48 : f32 to vector<2x32xf32>
    %189 = arith.cmpf ogt, %187, %188 : vector<2x32xf32>
    %c4_49 = arith.constant 4 : index
    %c0_50 = arith.constant 0 : index
    %c0_51 = arith.constant 0 : index
    %190 = vector.load %arg0[%c4_49, %c0_50, %c0_51] : memref<8x2x128xf32, #tpu.memory_space<vmem>>, vector<1x2x128xf32>
    %191 = vector.shape_cast %190 : vector<1x2x128xf32> to vector<2x128xf32>
    %cst_52 = arith.constant dense<0.000000e+00> : vector<2x128xf32>
    %192 = tpu.matmul %164, %0, %cst_52 {dimension_numbers = #tpu.dot_dimension_numbers<[1], [0], [0], [1], [0, 0, 1, 1], [], []>} : vector<2x32xf32>, vector<32x128xf32>, vector<2x128xf32> -> vector<2x128xf32>
    %193 = arith.addf %191, %192 : vector<2x128xf32>
    %194 = arith.negf %193 : vector<2x128xf32>
    %195 = math.exp %194 : vector<2x128xf32>
    %cst_53 = arith.constant 1.000000e+00 : f32
    %196 = vector.broadcast %cst_53 : f32 to vector<2x128xf32>
    %197 = arith.addf %196, %195 : vector<2x128xf32>
    %198 = arith.divf %196, %197 : vector<2x128xf32>
    %199 = math.tanh %193 : vector<2x128xf32>
    %200 = vector.extract_strided_slice %198 {offsets = [0, 0], sizes = [2, 32], strides = [1, 1]} : vector<2x128xf32> to vector<2x32xf32>
    %201 = vector.extract_strided_slice %198 {offsets = [0, 32], sizes = [2, 32], strides = [1, 1]} : vector<2x128xf32> to vector<2x32xf32>
    %202 = vector.extract_strided_slice %199 {offsets = [0, 64], sizes = [2, 32], strides = [1, 1]} : vector<2x128xf32> to vector<2x32xf32>
    %203 = vector.extract_strided_slice %198 {offsets = [0, 96], sizes = [2, 32], strides = [1, 1]} : vector<2x128xf32> to vector<2x32xf32>
    %204 = arith.mulf %201, %165 : vector<2x32xf32>
    %205 = arith.mulf %200, %202 : vector<2x32xf32>
    %206 = arith.addf %204, %205 : vector<2x32xf32>
    %207 = math.tanh %206 : vector<2x32xf32>
    %208 = arith.mulf %203, %207 : vector<2x32xf32>
    %209 = arith.select %189, %208, %164 : vector<2x32xi1>, vector<2x32xf32>
    %210 = arith.select %189, %206, %165 : vector<2x32xi1>, vector<2x32xf32>
    %211 = tpu.concatenate %209, %184 in 1 : vector<2x32xf32>, vector<2x32xf32> -> vector<2x64xf32>
    %cst_54 = arith.constant dense<0.000000e+00> : vector<2x128xf32>
    %212 = tpu.matmul %211, %1, %cst_54 {dimension_numbers = #tpu.dot_dimension_numbers<[1], [0], [0], [1], [0, 0, 1, 1], [], []>} : vector<2x64xf32>, vector<64x128xf32>, vector<2x128xf32> -> vector<2x128xf32>
    %213 = arith.addf %212, %4 : vector<2x128xf32>
    %214 = arith.negf %213 : vector<2x128xf32>
    %215 = math.exp %214 : vector<2x128xf32>
    %cst_55 = arith.constant 1.000000e+00 : f32
    %216 = vector.broadcast %cst_55 : f32 to vector<2x128xf32>
    %217 = arith.addf %216, %215 : vector<2x128xf32>
    %218 = arith.divf %216, %217 : vector<2x128xf32>
    %219 = math.tanh %213 : vector<2x128xf32>
    %220 = vector.extract_strided_slice %218 {offsets = [0, 0], sizes = [2, 32], strides = [1, 1]} : vector<2x128xf32> to vector<2x32xf32>
    %221 = vector.extract_strided_slice %218 {offsets = [0, 32], sizes = [2, 32], strides = [1, 1]} : vector<2x128xf32> to vector<2x32xf32>
    %222 = vector.extract_strided_slice %219 {offsets = [0, 64], sizes = [2, 32], strides = [1, 1]} : vector<2x128xf32> to vector<2x32xf32>
    %223 = vector.extract_strided_slice %218 {offsets = [0, 96], sizes = [2, 32], strides = [1, 1]} : vector<2x128xf32> to vector<2x32xf32>
    %224 = arith.mulf %221, %185 : vector<2x32xf32>
    %225 = arith.mulf %220, %222 : vector<2x32xf32>
    %226 = arith.addf %224, %225 : vector<2x32xf32>
    %227 = math.tanh %226 : vector<2x32xf32>
    %228 = arith.mulf %223, %227 : vector<2x32xf32>
    %229 = arith.select %189, %228, %184 : vector<2x32xi1>, vector<2x32xf32>
    %230 = arith.select %189, %226, %185 : vector<2x32xi1>, vector<2x32xf32>
    %c5 = arith.constant 5 : index
    %c0_56 = arith.constant 0 : index
    %c0_57 = arith.constant 0 : index
    %231 = vector.load %arg1[%c5, %c0_56, %c0_57] : memref<8x2x32xf32, #tpu.memory_space<vmem>>, vector<1x2x32xf32>
    %232 = vector.shape_cast %231 : vector<1x2x32xf32> to vector<2x32xf32>
    %cst_58 = arith.constant 0.000000e+00 : f32
    %233 = vector.broadcast %cst_58 : f32 to vector<2x32xf32>
    %234 = arith.cmpf ogt, %232, %233 : vector<2x32xf32>
    %c5_59 = arith.constant 5 : index
    %c0_60 = arith.constant 0 : index
    %c0_61 = arith.constant 0 : index
    %235 = vector.load %arg0[%c5_59, %c0_60, %c0_61] : memref<8x2x128xf32, #tpu.memory_space<vmem>>, vector<1x2x128xf32>
    %236 = vector.shape_cast %235 : vector<1x2x128xf32> to vector<2x128xf32>
    %cst_62 = arith.constant dense<0.000000e+00> : vector<2x128xf32>
    %237 = tpu.matmul %209, %0, %cst_62 {dimension_numbers = #tpu.dot_dimension_numbers<[1], [0], [0], [1], [0, 0, 1, 1], [], []>} : vector<2x32xf32>, vector<32x128xf32>, vector<2x128xf32> -> vector<2x128xf32>
    %238 = arith.addf %236, %237 : vector<2x128xf32>
    %239 = arith.negf %238 : vector<2x128xf32>
    %240 = math.exp %239 : vector<2x128xf32>
    %cst_63 = arith.constant 1.000000e+00 : f32
    %241 = vector.broadcast %cst_63 : f32 to vector<2x128xf32>
    %242 = arith.addf %241, %240 : vector<2x128xf32>
    %243 = arith.divf %241, %242 : vector<2x128xf32>
    %244 = math.tanh %238 : vector<2x128xf32>
    %245 = vector.extract_strided_slice %243 {offsets = [0, 0], sizes = [2, 32], strides = [1, 1]} : vector<2x128xf32> to vector<2x32xf32>
    %246 = vector.extract_strided_slice %243 {offsets = [0, 32], sizes = [2, 32], strides = [1, 1]} : vector<2x128xf32> to vector<2x32xf32>
    %247 = vector.extract_strided_slice %244 {offsets = [0, 64], sizes = [2, 32], strides = [1, 1]} : vector<2x128xf32> to vector<2x32xf32>
    %248 = vector.extract_strided_slice %243 {offsets = [0, 96], sizes = [2, 32], strides = [1, 1]} : vector<2x128xf32> to vector<2x32xf32>
    %249 = arith.mulf %246, %210 : vector<2x32xf32>
    %250 = arith.mulf %245, %247 : vector<2x32xf32>
    %251 = arith.addf %249, %250 : vector<2x32xf32>
    %252 = math.tanh %251 : vector<2x32xf32>
    %253 = arith.mulf %248, %252 : vector<2x32xf32>
    %254 = arith.select %234, %253, %209 : vector<2x32xi1>, vector<2x32xf32>
    %255 = arith.select %234, %251, %210 : vector<2x32xi1>, vector<2x32xf32>
    %256 = tpu.concatenate %254, %229 in 1 : vector<2x32xf32>, vector<2x32xf32> -> vector<2x64xf32>
    %cst_64 = arith.constant dense<0.000000e+00> : vector<2x128xf32>
    %257 = tpu.matmul %256, %1, %cst_64 {dimension_numbers = #tpu.dot_dimension_numbers<[1], [0], [0], [1], [0, 0, 1, 1], [], []>} : vector<2x64xf32>, vector<64x128xf32>, vector<2x128xf32> -> vector<2x128xf32>
    %258 = arith.addf %257, %4 : vector<2x128xf32>
    %259 = arith.negf %258 : vector<2x128xf32>
    %260 = math.exp %259 : vector<2x128xf32>
    %cst_65 = arith.constant 1.000000e+00 : f32
    %261 = vector.broadcast %cst_65 : f32 to vector<2x128xf32>
    %262 = arith.addf %261, %260 : vector<2x128xf32>
    %263 = arith.divf %261, %262 : vector<2x128xf32>
    %264 = math.tanh %258 : vector<2x128xf32>
    %265 = vector.extract_strided_slice %263 {offsets = [0, 0], sizes = [2, 32], strides = [1, 1]} : vector<2x128xf32> to vector<2x32xf32>
    %266 = vector.extract_strided_slice %263 {offsets = [0, 32], sizes = [2, 32], strides = [1, 1]} : vector<2x128xf32> to vector<2x32xf32>
    %267 = vector.extract_strided_slice %264 {offsets = [0, 64], sizes = [2, 32], strides = [1, 1]} : vector<2x128xf32> to vector<2x32xf32>
    %268 = vector.extract_strided_slice %263 {offsets = [0, 96], sizes = [2, 32], strides = [1, 1]} : vector<2x128xf32> to vector<2x32xf32>
    %269 = arith.mulf %266, %230 : vector<2x32xf32>
    %270 = arith.mulf %265, %267 : vector<2x32xf32>
    %271 = arith.addf %269, %270 : vector<2x32xf32>
    %272 = math.tanh %271 : vector<2x32xf32>
    %273 = arith.mulf %268, %272 : vector<2x32xf32>
    %274 = arith.select %234, %273, %229 : vector<2x32xi1>, vector<2x32xf32>
    %275 = arith.select %234, %271, %230 : vector<2x32xi1>, vector<2x32xf32>
    %c6 = arith.constant 6 : index
    %c0_66 = arith.constant 0 : index
    %c0_67 = arith.constant 0 : index
    %276 = vector.load %arg1[%c6, %c0_66, %c0_67] : memref<8x2x32xf32, #tpu.memory_space<vmem>>, vector<1x2x32xf32>
    %277 = vector.shape_cast %276 : vector<1x2x32xf32> to vector<2x32xf32>
    %cst_68 = arith.constant 0.000000e+00 : f32
    %278 = vector.broadcast %cst_68 : f32 to vector<2x32xf32>
    %279 = arith.cmpf ogt, %277, %278 : vector<2x32xf32>
    %c6_69 = arith.constant 6 : index
    %c0_70 = arith.constant 0 : index
    %c0_71 = arith.constant 0 : index
    %280 = vector.load %arg0[%c6_69, %c0_70, %c0_71] : memref<8x2x128xf32, #tpu.memory_space<vmem>>, vector<1x2x128xf32>
    %281 = vector.shape_cast %280 : vector<1x2x128xf32> to vector<2x128xf32>
    %cst_72 = arith.constant dense<0.000000e+00> : vector<2x128xf32>
    %282 = tpu.matmul %254, %0, %cst_72 {dimension_numbers = #tpu.dot_dimension_numbers<[1], [0], [0], [1], [0, 0, 1, 1], [], []>} : vector<2x32xf32>, vector<32x128xf32>, vector<2x128xf32> -> vector<2x128xf32>
    %283 = arith.addf %281, %282 : vector<2x128xf32>
    %284 = arith.negf %283 : vector<2x128xf32>
    %285 = math.exp %284 : vector<2x128xf32>
    %cst_73 = arith.constant 1.000000e+00 : f32
    %286 = vector.broadcast %cst_73 : f32 to vector<2x128xf32>
    %287 = arith.addf %286, %285 : vector<2x128xf32>
    %288 = arith.divf %286, %287 : vector<2x128xf32>
    %289 = math.tanh %283 : vector<2x128xf32>
    %290 = vector.extract_strided_slice %288 {offsets = [0, 0], sizes = [2, 32], strides = [1, 1]} : vector<2x128xf32> to vector<2x32xf32>
    %291 = vector.extract_strided_slice %288 {offsets = [0, 32], sizes = [2, 32], strides = [1, 1]} : vector<2x128xf32> to vector<2x32xf32>
    %292 = vector.extract_strided_slice %289 {offsets = [0, 64], sizes = [2, 32], strides = [1, 1]} : vector<2x128xf32> to vector<2x32xf32>
    %293 = vector.extract_strided_slice %288 {offsets = [0, 96], sizes = [2, 32], strides = [1, 1]} : vector<2x128xf32> to vector<2x32xf32>
    %294 = arith.mulf %291, %255 : vector<2x32xf32>
    %295 = arith.mulf %290, %292 : vector<2x32xf32>
    %296 = arith.addf %294, %295 : vector<2x32xf32>
    %297 = math.tanh %296 : vector<2x32xf32>
    %298 = arith.mulf %293, %297 : vector<2x32xf32>
    %299 = arith.select %279, %298, %254 : vector<2x32xi1>, vector<2x32xf32>
    %300 = arith.select %279, %296, %255 : vector<2x32xi1>, vector<2x32xf32>
    %301 = tpu.concatenate %299, %274 in 1 : vector<2x32xf32>, vector<2x32xf32> -> vector<2x64xf32>
    %cst_74 = arith.constant dense<0.000000e+00> : vector<2x128xf32>
    %302 = tpu.matmul %301, %1, %cst_74 {dimension_numbers = #tpu.dot_dimension_numbers<[1], [0], [0], [1], [0, 0, 1, 1], [], []>} : vector<2x64xf32>, vector<64x128xf32>, vector<2x128xf32> -> vector<2x128xf32>
    %303 = arith.addf %302, %4 : vector<2x128xf32>
    %304 = arith.negf %303 : vector<2x128xf32>
    %305 = math.exp %304 : vector<2x128xf32>
    %cst_75 = arith.constant 1.000000e+00 : f32
    %306 = vector.broadcast %cst_75 : f32 to vector<2x128xf32>
    %307 = arith.addf %306, %305 : vector<2x128xf32>
    %308 = arith.divf %306, %307 : vector<2x128xf32>
    %309 = math.tanh %303 : vector<2x128xf32>
    %310 = vector.extract_strided_slice %308 {offsets = [0, 0], sizes = [2, 32], strides = [1, 1]} : vector<2x128xf32> to vector<2x32xf32>
    %311 = vector.extract_strided_slice %308 {offsets = [0, 32], sizes = [2, 32], strides = [1, 1]} : vector<2x128xf32> to vector<2x32xf32>
    %312 = vector.extract_strided_slice %309 {offsets = [0, 64], sizes = [2, 32], strides = [1, 1]} : vector<2x128xf32> to vector<2x32xf32>
    %313 = vector.extract_strided_slice %308 {offsets = [0, 96], sizes = [2, 32], strides = [1, 1]} : vector<2x128xf32> to vector<2x32xf32>
    %314 = arith.mulf %311, %275 : vector<2x32xf32>
    %315 = arith.mulf %310, %312 : vector<2x32xf32>
    %316 = arith.addf %314, %315 : vector<2x32xf32>
    %317 = math.tanh %316 : vector<2x32xf32>
    %318 = arith.mulf %313, %317 : vector<2x32xf32>
    %319 = arith.select %279, %318, %274 : vector<2x32xi1>, vector<2x32xf32>
    %320 = arith.select %279, %316, %275 : vector<2x32xi1>, vector<2x32xf32>
    %c7 = arith.constant 7 : index
    %c0_76 = arith.constant 0 : index
    %c0_77 = arith.constant 0 : index
    %321 = vector.load %arg1[%c7, %c0_76, %c0_77] : memref<8x2x32xf32, #tpu.memory_space<vmem>>, vector<1x2x32xf32>
    %322 = vector.shape_cast %321 : vector<1x2x32xf32> to vector<2x32xf32>
    %cst_78 = arith.constant 0.000000e+00 : f32
    %323 = vector.broadcast %cst_78 : f32 to vector<2x32xf32>
    %324 = arith.cmpf ogt, %322, %323 : vector<2x32xf32>
    %c7_79 = arith.constant 7 : index
    %c0_80 = arith.constant 0 : index
    %c0_81 = arith.constant 0 : index
    %325 = vector.load %arg0[%c7_79, %c0_80, %c0_81] : memref<8x2x128xf32, #tpu.memory_space<vmem>>, vector<1x2x128xf32>
    %326 = vector.shape_cast %325 : vector<1x2x128xf32> to vector<2x128xf32>
    %cst_82 = arith.constant dense<0.000000e+00> : vector<2x128xf32>
    %327 = tpu.matmul %299, %0, %cst_82 {dimension_numbers = #tpu.dot_dimension_numbers<[1], [0], [0], [1], [0, 0, 1, 1], [], []>} : vector<2x32xf32>, vector<32x128xf32>, vector<2x128xf32> -> vector<2x128xf32>
    %328 = arith.addf %326, %327 : vector<2x128xf32>
    %329 = arith.negf %328 : vector<2x128xf32>
    %330 = math.exp %329 : vector<2x128xf32>
    %cst_83 = arith.constant 1.000000e+00 : f32
    %331 = vector.broadcast %cst_83 : f32 to vector<2x128xf32>
    %332 = arith.addf %331, %330 : vector<2x128xf32>
    %333 = arith.divf %331, %332 : vector<2x128xf32>
    %334 = math.tanh %328 : vector<2x128xf32>
    %335 = vector.extract_strided_slice %333 {offsets = [0, 0], sizes = [2, 32], strides = [1, 1]} : vector<2x128xf32> to vector<2x32xf32>
    %336 = vector.extract_strided_slice %333 {offsets = [0, 32], sizes = [2, 32], strides = [1, 1]} : vector<2x128xf32> to vector<2x32xf32>
    %337 = vector.extract_strided_slice %334 {offsets = [0, 64], sizes = [2, 32], strides = [1, 1]} : vector<2x128xf32> to vector<2x32xf32>
    %338 = vector.extract_strided_slice %333 {offsets = [0, 96], sizes = [2, 32], strides = [1, 1]} : vector<2x128xf32> to vector<2x32xf32>
    %339 = arith.mulf %336, %300 : vector<2x32xf32>
    %340 = arith.mulf %335, %337 : vector<2x32xf32>
    %341 = arith.addf %339, %340 : vector<2x32xf32>
    %342 = math.tanh %341 : vector<2x32xf32>
    %343 = arith.mulf %338, %342 : vector<2x32xf32>
    %344 = arith.select %324, %343, %299 : vector<2x32xi1>, vector<2x32xf32>
    %345 = tpu.concatenate %344, %319 in 1 : vector<2x32xf32>, vector<2x32xf32> -> vector<2x64xf32>
    %cst_84 = arith.constant dense<0.000000e+00> : vector<2x128xf32>
    %346 = tpu.matmul %345, %1, %cst_84 {dimension_numbers = #tpu.dot_dimension_numbers<[1], [0], [0], [1], [0, 0, 1, 1], [], []>} : vector<2x64xf32>, vector<64x128xf32>, vector<2x128xf32> -> vector<2x128xf32>
    %347 = arith.addf %346, %4 : vector<2x128xf32>
    %348 = arith.negf %347 : vector<2x128xf32>
    %349 = math.exp %348 : vector<2x128xf32>
    %cst_85 = arith.constant 1.000000e+00 : f32
    %350 = vector.broadcast %cst_85 : f32 to vector<2x128xf32>
    %351 = arith.addf %350, %349 : vector<2x128xf32>
    %352 = arith.divf %350, %351 : vector<2x128xf32>
    %353 = math.tanh %347 : vector<2x128xf32>
    %354 = vector.extract_strided_slice %352 {offsets = [0, 0], sizes = [2, 32], strides = [1, 1]} : vector<2x128xf32> to vector<2x32xf32>
    %355 = vector.extract_strided_slice %352 {offsets = [0, 32], sizes = [2, 32], strides = [1, 1]} : vector<2x128xf32> to vector<2x32xf32>
    %356 = vector.extract_strided_slice %353 {offsets = [0, 64], sizes = [2, 32], strides = [1, 1]} : vector<2x128xf32> to vector<2x32xf32>
    %357 = vector.extract_strided_slice %352 {offsets = [0, 96], sizes = [2, 32], strides = [1, 1]} : vector<2x128xf32> to vector<2x32xf32>
    %358 = arith.mulf %355, %320 : vector<2x32xf32>
    %359 = arith.mulf %354, %356 : vector<2x32xf32>
    %360 = arith.addf %358, %359 : vector<2x32xf32>
    %361 = math.tanh %360 : vector<2x32xf32>
    %362 = arith.mulf %357, %361 : vector<2x32xf32>
    %363 = arith.select %324, %362, %319 : vector<2x32xi1>, vector<2x32xf32>
    %cst_86 = arith.constant dense<0.000000e+00> : vector<2xf32>
    %364 = vector.multi_reduction <add>, %363, %cst_86 [1] : vector<2x32xf32> to vector<2xf32>
    %365 = vector.shape_cast %364 : vector<2xf32> to vector<2x1xf32>
    %cst_87 = arith.constant 3.200000e+01 : f32
    %366 = vector.broadcast %cst_87 : f32 to vector<2x1xf32>
    %367 = arith.divf %365, %366 : vector<2x1xf32>
    %368 = vector.broadcast %367 : vector<2x1xf32> to vector<2x32xf32>
    %369 = arith.subf %363, %368 : vector<2x32xf32>
    %370 = arith.mulf %369, %369 : vector<2x32xf32>
    %cst_88 = arith.constant dense<0.000000e+00> : vector<2xf32>
    %371 = vector.multi_reduction <add>, %370, %cst_88 [1] : vector<2x32xf32> to vector<2xf32>
    %372 = vector.shape_cast %371 : vector<2xf32> to vector<2x1xf32>
    %cst_89 = arith.constant 3.200000e+01 : f32
    %373 = vector.broadcast %cst_89 : f32 to vector<2x1xf32>
    %374 = arith.divf %372, %373 : vector<2x1xf32>
    %375 = vector.broadcast %367 : vector<2x1xf32> to vector<2x32xf32>
    %376 = arith.subf %363, %375 : vector<2x32xf32>
    %cst_90 = arith.constant 9.99999974E-6 : f32
    %377 = vector.broadcast %cst_90 : f32 to vector<2x1xf32>
    %378 = arith.addf %374, %377 : vector<2x1xf32>
    %379 = math.rsqrt %378 : vector<2x1xf32>
    %380 = vector.broadcast %379 : vector<2x1xf32> to vector<2x32xf32>
    %381 = arith.mulf %376, %380 : vector<2x32xf32>
    %c0_91 = arith.constant 0 : index
    %c0_92 = arith.constant 0 : index
    %382 = vector.load %arg5[%c0_91, %c0_92] : memref<1x32xf32, #tpu.memory_space<vmem>>, vector<1x32xf32>
    %383 = vector.broadcast %382 : vector<1x32xf32> to vector<2x32xf32>
    %384 = arith.mulf %381, %383 : vector<2x32xf32>
    %c0_93 = arith.constant 0 : index
    %c0_94 = arith.constant 0 : index
    %385 = vector.load %arg6[%c0_93, %c0_94] : memref<1x32xf32, #tpu.memory_space<vmem>>, vector<1x32xf32>
    %386 = vector.broadcast %385 : vector<1x32xf32> to vector<2x32xf32>
    %387 = arith.addf %384, %386 : vector<2x32xf32>
    %cst_95 = arith.constant 0.000000e+00 : f32
    %388 = vector.broadcast %cst_95 : f32 to vector<2x32xf32>
    %389 = arith.maximumf %387, %388 : vector<2x32xf32>
    %c0_96 = arith.constant 0 : index
    %c0_97 = arith.constant 0 : index
    %390 = vector.load %arg7[%c0_96, %c0_97] : memref<32x2xf32, #tpu.memory_space<vmem>>, vector<32x2xf32>
    %cst_98 = arith.constant dense<0.000000e+00> : vector<2x2xf32>
    %391 = tpu.matmul %389, %390, %cst_98 {dimension_numbers = #tpu.dot_dimension_numbers<[1], [0], [0], [1], [0, 0, 1, 1], [], []>} : vector<2x32xf32>, vector<32x2xf32>, vector<2x2xf32> -> vector<2x2xf32>
    %c0_99 = arith.constant 0 : index
    %c0_100 = arith.constant 0 : index
    %392 = vector.load %arg8[%c0_99, %c0_100] : memref<1x2xf32, #tpu.memory_space<vmem>>, vector<1x2xf32>
    %393 = vector.broadcast %392 : vector<1x2xf32> to vector<2x2xf32>
    %394 = arith.addf %391, %393 : vector<2x2xf32>
    %c0_101 = arith.constant 0 : index
    %c0_102 = arith.constant 0 : index
    %395 = vector.load %arg9[%c0_101, %c0_102] : memref<2x2xf32, #tpu.memory_space<vmem>>, vector<2x2xf32>
    tpu.vector_store %arg9[%c0_101, %c0_102], %394 {strides = array<i32>} : memref<2x2xf32, #tpu.memory_space<vmem>>, vector<2x2xf32>,
    return
  }
}

</mosaic_0001>

<bundles_post_ra>
// kernel: tpu_custom_call.1
= control target key start
LH: loop header
LB: loop body
LE: loop exit
PB: predicated region body
PF: predicated region fallthrough
CT: control target
= control target key end

     0   :  { %14 = vsyncpa [#allocation3], 0  ;;  %s3414_s0 = inlined_call_operand.hbm [shape: f32[8,2,128], index: 0, kind: input, shape index: {}]   ;;  %s3415_s1 = inlined_call_operand.hbm [shape: f32[8,2,32], index: 1, kind: input, shape index: {}]   ;;  %s3416_s2 = inlined_call_operand.vmem [shape: f32[32,128], index: 2, kind: input, shape index: {}]   ;;  %s3417_s3 = inlined_call_operand.hbm [shape: f32[64,128], index: 3, kind: input, shape index: {}]   ;;  %s3418_s4 = inlined_call_operand.vmem [shape: f32[1,128], index: 4, kind: input, shape index: {}]   ;;  %s3419_s5 = inlined_call_operand.vmem [shape: f32[1,32], index: 5, kind: input, shape index: {}]   ;;  %s3420_s6 = inlined_call_operand.vmem [shape: f32[1,32], index: 6, kind: input, shape index: {}]   ;;  %s3421_s7 = inlined_call_operand.vmem [shape: f32[32,2], index: 7, kind: input, shape index: {}]   ;;  %s3422_s8 = inlined_call_operand.vmem [shape: f32[1,2], index: 8, kind: input, shape index: {}]   ;;  %s3423_s9 = inlined_call_operand.hbm [shape: f32[2,2], index: 9, kind: output, shape index: {}]  }
   0x1   :  { %15 = vsyncpa [#allocation6], 0 }
   0x2   :  { %16 = vsyncpa [#allocation4], 0  ;;  %s2714_s30 = smov [#allocation5]   ;;  %s2715_s11 = smov [#allocation2]  }
   0x3   :  { %s34_s10 = sshll.u32 %s2714_s30, 4  ;;  %s22_s12 = sshll.u32 %s2715_s11, 4  ;;  %s35_s10 = int_to_ptr.vmem [resolvable:$true] %s34_s10  ;;  %s23_s12 = int_to_ptr.vmem [resolvable:$true] %s22_s12 }
   0x4   :  { %s2636_s13 = scalar_lea.vmem %s35_s10, 256  ;;  %p2641_p1 = scmp.lt.s32.totalorder %s35_s10, %s35_s10 }
   0x5   :  { %p2637_p0 = scmp.ne.s32.totalorder %s35_s10, %s2636_s13  ;;  %p2642_p2 = scmp.lt.s32.totalorder %s2636_s13, %s2636_s13 }
   0x7   :  { %p2643_p3 = por %p2642_p2, %p2641_p1 }
   0x9   :  { %p2644_p4 = pnand %p2643_p3, %p2637_p0 }
   0xb   :  { %2647 = shalt.err (!%p2644_p4)
}
   0xc   :  { %s2716_s14 = smov 32   ;;  %s2717_s15 = smov 2  }
   0xd   :  { %40 = dma.hbm_to_vmem [thread:$0]  %s3415_s1, 256, %s35_s10, [#allocation6], %s2716_s14, %s2716_s14, %s2717_s15  }
   0xe   :  { %s2656_s18 = scalar_lea.vmem %s23_s12, 256  ;;  %p2661_p6 = scmp.lt.s32.totalorder %s23_s12, %s23_s12 }
   0xf   :  { %p2657_p5 = scmp.ne.s32.totalorder %s23_s12, %s2656_s18  ;;  %p2662_p7 = scmp.lt.s32.totalorder %s2656_s18, %s2656_s18 }
  0x11   :  { %p2663_p8 = por %p2662_p7, %p2661_p6 }
  0x13   :  { %p2664_p9 = pnand %p2663_p8, %p2657_p5 }
  0x15   :  { %2667 = shalt.err (!%p2664_p9)
}
  0x16   :  { %28 = dma.hbm_to_vmem [thread:$0]  %s3414_s0, 256, %s23_s12, [#allocation3], %s2716_s14, %s2716_s14, %s2717_s15  }
  0x17   :  { %s2718_s21 = smov [#allocation7]  }
  0x18   :  { %s48_s22 = sshll.u32 %s2718_s21, 4  ;;  %s49_s22 = int_to_ptr.vmem [resolvable:$true] %s48_s22 }
  0x19   :  { %s2676_s23 = scalar_lea.vmem %s49_s22, 1024  ;;  %p2681_p11 = scmp.lt.s32.totalorder %s49_s22, %s49_s22 }
  0x1a   :  { %p2677_p10 = scmp.ne.s32.totalorder %s49_s22, %s2676_s23  ;;  %p2682_p12 = scmp.lt.s32.totalorder %s2676_s23, %s2676_s23 }
  0x1c   :  { %p2683_p13 = por %p2682_p12, %p2681_p11 }
  0x1e   :  { %p2684_p0 = pnand %p2683_p13, %p2677_p10 }
  0x20   :  { %2687 = shalt.err (!%p2684_p0)
}
  0x21   :  { %s2719_s1 = smov 128   ;;  %s2720_s24 = smov 8  }
  0x22   :  { %54 = dma.hbm_to_vmem [thread:$0]  %s3417_s3, 1024, %s49_s22, [#allocation6], %s2719_s1, %s2719_s1, %s2720_s24  }
  0x23   :  { %2708 = dma.done.wait [#allocation3], 256  }
  0x24   :  { %2709 = vsyncadd [#allocation3], 4294967040 }
  0x25   :  { %2710 = dma.done.wait [#allocation6], 1280  }
  0x26   :  { %2711 = vsyncadd [#allocation6], 4294966016  ;;  %v2721_v0 = vmov 0.0   ;;  %vm2722_vm0 = vmmov 0   ;;  %v2798_v1 = vld [vmem:[%s3416_s2 + $0x18] sm:$0xff]  ;;  %v2803_v2 = vld [vmem:[%s3416_s2 + $0x10] sm:$0xff] }
  0x27   :  { %2222 = vmatprep.subr.mxu0 %v2721_v0  ;;  %2230 = vmatprep.mubr.msk.f32.mxu0 %vm2722_vm0, %v2721_v0  ;;  %v2810_v3 = vld [vmem:[%s3416_s2 + $0x8] sm:$0xff]  ;;  %v2817_v4 = vld [vmem:[%s3416_s2] sm:$0xff]  ;;  %s2723_s12 = smov 64   ;;  %v2836_v19 = vld [vmem:[#allocation7 + $0x38] sm:$0xff]  ;;  %s2724_s13 = smov 96   ;;  %vm96_vm2 = vcmask 261120  }
  0x28   :  { %2233 = vmatprep.subr.mxu1 %v2721_v0  ;;  %2249 = vmatprep.mubr.msk.f32.mxu1 %vm2722_vm0, %v2721_v0  ;;  %v95_v5 = vld [vmem:[#allocation2] sm:$0x3]  ;;  %v2838_v20 = vld [vmem:[#allocation7 + $0x30] sm:$0xff]  ;;  %v2842_v21 = vld [vmem:[#allocation7 + $0x28] sm:$0xff]  ;;  %vm206_vm3 = vcmask 523264   ;;  %vm1935_vm11 = vcmask 254976  }
  0x29   :  { %2223 = vmatpush3.msra.mxu0 %v2798_v1  ;;  %2234 = vmatpush3.msra.mxu1 %v2836_v19  ;;  %v2846_v22 = vld [vmem:[#allocation7 + $0x20] sm:$0xff]  ;;  %v2850_v24 = vld [vmem:[#allocation7 + $0x18] sm:$0xff]  ;;  %v2855_v25 = vld [vmem:[#allocation7 + $0x10] sm:$0xff]  ;;  %vm2051_vm12 = vcmask 9216  }
  0x2a   :  { %2224 = vmatprep.subr.mxu0 %v2721_v0  ;;  %2235 = vmatprep.subr.mxu1 %v2721_v0  ;;  %v2859_v26 = vld [vmem:[#allocation7 + $0x8] sm:$0xff]  ;;  %v2865_v27 = vld [vmem:[#allocation7] sm:$0xff]  ;;  %v2871_v30 = vld [vmem:[#allocation5] sm:$0x3] }
  0x2b   :  { %2225 = vmatpush3.msra.mxu0 %v2803_v2  ;;  %2236 = vmatpush3.msra.mxu1 %v2838_v20  ;;  %vm94_vm1 = vcmp.gt.f32.partialorder %v2871_v30, 0.0  ;;  %v2914_v34 = vld [vmem:[%s3418_s4] ss:$0 sm:$0xff]  ;;  %v318_v36 = vld [vmem:[#allocation2 + $0x2] sm:$0x3] }
  0x2c   :  { %2226 = vmatprep.subr.mxu0 %v2721_v0  ;;  %2237 = vmatprep.subr.mxu1 %v2721_v0 }
  0x2d   :  { %2227 = vmatpush3.msra.mxu0 %v2810_v3  ;;  %2238 = vmatpush3.msra.mxu1 %v2842_v21 }
  0x2e   :  { %2228 = vmatprep.subr.mxu0 %v2721_v0  ;;  %2239 = vmatprep.subr.mxu1 %v2721_v0 }
  0x2f   :  { %2229 = vmatpush3.msra.mxu0 %v2817_v4  ;;  %2240 = vmatpush3.msra.mxu1 %v2846_v22 }
  0x30   :  { %2231 = vmatmul.mubr.f32.vlgmr.msra.gmra.mxu0 %v2721_v0  ;;  %2252 = vmatprep.subr.mxu0 %v2721_v0 }
  0x31   :  { %2253 = vmatpush3.msra.mxu0 %v2798_v1  ;;  %2260 = vmatprep.mubr.msk.f32.mxu0 %vm2722_vm0, %v2721_v0 }
  0x32   :  { %2254 = vmatprep.subr.mxu0 %v2721_v0  ;;  %2241 = vmatprep.subr.mxu1 %v2721_v0 }
  0x33   :  { %2255 = vmatpush3.msra.mxu0 %v2803_v2  ;;  %2242 = vmatpush3.msra.mxu1 %v2850_v24 }
  0x34   :  { %2256 = vmatprep.subr.mxu0 %v2721_v0  ;;  %2243 = vmatprep.subr.mxu1 %v2721_v0 }
  0x35   :  { %2257 = vmatpush3.msra.mxu0 %v2810_v3  ;;  %2244 = vmatpush3.msra.mxu1 %v2855_v25 }
  0x36   :  { %2258 = vmatprep.subr.mxu0 %v2721_v0  ;;  %2245 = vmatprep.subr.mxu1 %v2721_v0 }
  0x37   :  { %2259 = vmatpush3.msra.mxu0 %v2817_v4  ;;  %2246 = vmatpush3.msra.mxu1 %v2859_v26 }
  0x38   :  { %2263 = vmatprep.subr.mxu0 %v2721_v0  ;;  %2247 = vmatprep.subr.mxu1 %v2721_v0 }
  0x39   :  { %2248 = vmatpush3.msra.mxu1 %v2865_v27 }
  0x3a   :  { %2282 = vmatprep.subr.mxu1 %v2721_v0 }
  0xf0   :  { %v166_v6 = vpop.f32.mrf.mxu0 }
  0xf1   :  { %v170_v7 = vadd.f32 %v166_v6, %v95_v5 }
  0xf2   :  { %v2232_v8 = vpop.f32.mrf.mxu0 }
  0xf3   :  { %2485 = vtanh.f32 %v170_v7  ;;  %v2070_v10 = vmul.f32 -1.442695, %v170_v7 }
  0xf5   :  { %2487 = vpow2.f32 %v2070_v10 }
 0x100   :  { %v2486_v9 = vpop.eup %2485 }
 0x101   :  { %180 = vrot.lane.b32.xlu0 %v2486_v9, %s2723_s12 }
 0x102   :  { %v2488_v11 = vpop.eup %2487 }
 0x103   :  { %v174_v12 = vadd.f32 1.0, %v2488_v11 }
 0x105   :  { %2489 = vrcp.f32 %v174_v12  ;;  %v2933_v12 = vld [vmem:[#allocation5 + $0x2] sm:$0x3] }
 0x106   :  { %vm316_vm4 = vcmp.gt.f32.partialorder %v2933_v12, 0.0 }
 0x112   :  { %v2490_v13 = vpop.eup %2489 }
 0x113   :  { %v178_v16 = vmul.f32 0.0, %v2490_v13 }
 0x173   :  { %v181_v14 = vpop.permute.xlu0 %180 }
 0x174   :  { %v183_v15 = vmul.f32 %v2490_v13, %v181_v14 }
 0x176   :  { %185 = vrot.lane.b32.xlu0 %v183_v15, %s2716_s14 }
 0x1e8   :  { %v186_v17 = vpop.permute.xlu0 %185 }
 0x1e9   :  { %v188_v18 = vadd.f32 %v186_v17, %v178_v16 }
 0x1eb   :  { %2491 = vtanh.f32 %v188_v18 }
 0x1f8   :  { %v2492_v23 = vpop.eup %2491 }
 0x1f9   :  { %191 = vrot.lane.b32.xlu1 %v2492_v23, %s2723_s12  ;;  %v551_v23 = vld [vmem:[#allocation2 + $0x4] sm:$0x3] }
 0x26b   :  { %v192_v28 = vpop.permute.xlu1 %191 }
 0x26c   :  { %v194_v29 = vmul.f32 %v2490_v13, %v192_v28 }
 0x26e   :  { %196 = vrot.lane.b32.xlu1 %v194_v29, %s2716_s14 }
 0x272   :  { %201 = vrot.lane.b32.xlu1 %v188_v18, %s2724_s13 }
 0x2e0   :  { %v197_v31 = vpop.permute.xlu1 %196 }
 0x2e1   :  { %v2876_v32 = vsel %vm94_vm1, %v197_v31, 0.0 }
 0x2e2   :  { %v205_v33 = vsel %vm96_vm2, %v2876_v32, 0.0  ;;  %2261 = vmatmul.mubr.msk.f32.vlgmr.msra.gmra.mxu0 %vm96_vm2, %v2876_v32 }
 0x2e3   :  { %2250 = vmatmul.mubr.msk.f32.vlgmr.msra.gmra.mxu1 %vm206_vm3, %v205_v33  ;;  %2264 = vmatpush3.msra.mxu0 %v2836_v19 }
 0x2e4   :  { %2283 = vmatpush3.msra.mxu1 %v2798_v1  ;;  %2290 = vmatprep.mubr.msk.f32.mxu1 %vm2722_vm0, %v2721_v0  ;;  %v202_v44 = vpop.permute.xlu1 %201 }
 0x2e5   :  { %2284 = vmatprep.subr.mxu1 %v2721_v0  ;;  %2265 = vmatprep.subr.mxu0 %v2721_v0  ;;  %v2921_v45 = vsel %vm94_vm1, %v202_v44, 0.0 }
 0x2e6   :  { %2285 = vmatpush3.msra.mxu1 %v2803_v2  ;;  %2266 = vmatpush3.msra.mxu0 %v2838_v20 }
 0x2e7   :  { %2286 = vmatprep.subr.mxu1 %v2721_v0  ;;  %2267 = vmatprep.subr.mxu0 %v2721_v0 }
 0x2e8   :  { %2287 = vmatpush3.msra.mxu1 %v2810_v3  ;;  %2268 = vmatpush3.msra.mxu0 %v2842_v21 }
 0x2e9   :  { %2288 = vmatprep.subr.mxu1 %v2721_v0  ;;  %2269 = vmatprep.subr.mxu0 %v2721_v0 }
 0x2ea   :  { %2289 = vmatpush3.msra.mxu1 %v2817_v4  ;;  %2270 = vmatpush3.msra.mxu0 %v2846_v22 }
 0x2eb   :  { %2271 = vmatprep.subr.mxu0 %v2721_v0  ;;  %2279 = vmatprep.mubr.msk.f32.mxu0 %vm2722_vm0, %v2721_v0 }
 0x2ec   :  { %2272 = vmatpush3.msra.mxu0 %v2850_v24  ;;  %2293 = vmatprep.subr.mxu1 %v2721_v0 }
 0x2ed   :  { %2273 = vmatprep.subr.mxu0 %v2721_v0 }
 0x2ee   :  { %2274 = vmatpush3.msra.mxu0 %v2855_v25 }
 0x2ef   :  { %2275 = vmatprep.subr.mxu0 %v2721_v0 }
 0x2f0   :  { %2276 = vmatpush3.msra.mxu0 %v2859_v26 }
 0x2f1   :  { %2277 = vmatprep.subr.mxu0 %v2721_v0 }
 0x2f2   :  { %2278 = vmatpush3.msra.mxu0 %v2865_v27 }
 0x2f3   :  { %2312 = vmatprep.subr.mxu0 %v2721_v0 }
 0x3a2   :  { %v388_v35 = vpop.f32.mrf.mxu0 }
 0x3a3   :  { %v276_v37 = vpop.f32.mrf.mxu1  ;;  %v392_v41 = vadd.f32 %v388_v35, %v318_v36 }
 0x3a4   :  { %v277_v38 = vadd.f32 %v2914_v34, %v276_v37  ;;  %v2262_v39 = vpop.f32.mrf.mxu0 }
 0x3a5   :  { %v2251_v40 = vpop.f32.mrf.mxu1  ;;  %v2074_v47 = vmul.f32 -1.442695, %v392_v41 }
 0x3a6   :  { %2493 = vtanh.f32 %v277_v38  ;;  %v2072_v46 = vmul.f32 -1.442695, %v277_v38 }
 0x3a7   :  { %2495 = vtanh.f32 %v392_v41 }
 0x3a8   :  { %2497 = vpow2.f32 %v2072_v46 }
 0x3a9   :  { %2499 = vpow2.f32 %v2074_v47 }
 0x3b3   :  { %v2494_v42 = vpop.eup %2493 }
 0x3b4   :  { %289 = vrot.lane.b32.xlu0 %v2494_v42, %s2723_s12  ;;  %v2496_v43 = vpop.eup %2495 }
 0x3b5   :  { %v2498_v48 = vpop.eup %2497 }
 0x3b6   :  { %v283_v49 = vadd.f32 1.0, %v2498_v48  ;;  %v2500_v50 = vpop.eup %2499 }
 0x3b7   :  { %v396_v51 = vadd.f32 1.0, %v2500_v50 }
 0x3b8   :  { %406 = vrot.lane.b32.xlu0 %v2496_v43, %s2723_s12  ;;  %2501 = vrcp.f32 %v283_v49 }
 0x3b9   :  { %2503 = vrcp.f32 %v396_v51 }
 0x3bc   :  { %401 = vrot.lane.b32.xlu0 %v2921_v45, %s2716_s14 }
 0x3c5   :  { %v2502_v52 = vpop.eup %2501 }
 0x3c6   :  { %v2504_v55 = vpop.eup %2503  ;;  %v287_v58 = vmul.f32 0.0, %v2502_v52 }
 0x426   :  { %v290_v53 = vpop.permute.xlu0 %289 }
 0x427   :  { %v292_v54 = vmul.f32 %v2502_v52, %v290_v53 }
 0x429   :  { %294 = vrot.lane.b32.xlu1 %v292_v54, %s2716_s14 }
 0x42a   :  { %v407_v56 = vpop.permute.xlu0 %406 }
 0x42b   :  { %v409_v57 = vmul.f32 %v2504_v55, %v407_v56 }
 0x42d   :  { %411 = vrot.lane.b32.xlu1 %v409_v57, %s2716_s14 }
 0x42e   :  { %v402_v59 = vpop.permute.xlu0 %401 }
 0x42f   :  { %v404_v62 = vmul.f32 %v2504_v55, %v402_v59 }
 0x49b   :  { %v295_v60 = vpop.permute.xlu1 %294 }
 0x49c   :  { %v297_v61 = vadd.f32 %v295_v60, %v287_v58 }
 0x49e   :  { %2505 = vtanh.f32 %v297_v61 }
 0x49f   :  { %v412_v63 = vpop.permute.xlu1 %411 }
 0x4a0   :  { %v414_v5 = vadd.f32 %v412_v63, %v404_v62 }
 0x4a2   :  { %2507 = vtanh.f32 %v414_v5 }
 0x4ab   :  { %v2506_v6 = vpop.eup %2505 }
 0x4ac   :  { %300 = vrot.lane.b32.xlu0 %v2506_v6, %s2723_s12 }
 0x4af   :  { %v2508_v7 = vpop.eup %2507 }
 0x4b0   :  { %417 = vrot.lane.b32.xlu1 %v2508_v7, %s2723_s12 }
 0x51e   :  { %v301_v8 = vpop.permute.xlu0 %300 }
 0x51f   :  { %v303_v9 = vmul.f32 %v2502_v52, %v301_v8  ;;  %v3004_v8 = vld [vmem:[#allocation5 + $0x4] sm:$0x3] }
 0x520   :  { %vm549_vm5 = vcmp.gt.f32.partialorder %v3004_v8, 0.0 }
 0x521   :  { %305 = vrot.lane.b32.xlu0 %v303_v9, %s2716_s14 }
 0x522   :  { %v418_v10 = vpop.permute.xlu1 %417 }
 0x523   :  { %v420_v11 = vmul.f32 %v2504_v55, %v418_v10 }
 0x525   :  { %422 = vrot.lane.b32.xlu1 %v420_v11, %s2716_s14 }
 0x529   :  { %310 = vrot.lane.b32.xlu1 %v297_v61, %s2724_s13 }
 0x52d   :  { %427 = vrot.lane.b32.xlu1 %v414_v5, %s2724_s13 }
 0x593   :  { %v306_v13 = vpop.permute.xlu0 %305 }
 0x594   :  { %v2937_v14 = vsel %vm94_vm1, %v306_v13, 0.0 }
 0x595   :  { %432 = vrot.lane.b32.xlu0 %v2937_v14, %s2716_s14 }
 0x597   :  { %v423_v15 = vpop.permute.xlu1 %422 }
 0x598   :  { %v2945_v16 = vsel %vm316_vm4, %v423_v15, %v2876_v32 }
 0x599   :  { %2291 = vmatmul.mubr.msk.f32.vlgmr.msra.gmra.mxu1 %vm96_vm2, %v2945_v16 }
 0x59a   :  { %2294 = vmatpush3.msra.mxu1 %v2836_v19  ;;  %2309 = vmatprep.mubr.msk.f32.mxu1 %vm2722_vm0, %v2721_v0 }
 0x59b   :  { %2295 = vmatprep.subr.mxu1 %v2721_v0  ;;  %v311_v32 = vpop.permute.xlu1 %310 }
 0x59c   :  { %2296 = vmatpush3.msra.mxu1 %v2838_v20  ;;  %v2992_v41 = vsel %vm94_vm1, %v311_v32, 0.0 }
 0x59d   :  { %2297 = vmatprep.subr.mxu1 %v2721_v0 }
 0x59e   :  { %2298 = vmatpush3.msra.mxu1 %v2842_v21 }
 0x59f   :  { %2299 = vmatprep.subr.mxu1 %v2721_v0  ;;  %v428_v35 = vpop.permute.xlu1 %427 }
 0x5a0   :  { %2300 = vmatpush3.msra.mxu1 %v2846_v22  ;;  %v2984_v36 = vsel %vm316_vm4, %v428_v35, %v2921_v45 }
 0x5a1   :  { %2301 = vmatprep.subr.mxu1 %v2721_v0 }
 0x5a2   :  { %2302 = vmatpush3.msra.mxu1 %v2850_v24 }
 0x5a3   :  { %2303 = vmatprep.subr.mxu1 %v2721_v0 }
 0x5a4   :  { %2304 = vmatpush3.msra.mxu1 %v2855_v25 }
 0x5a5   :  { %2305 = vmatprep.subr.mxu1 %v2721_v0 }
 0x5a6   :  { %2306 = vmatpush3.msra.mxu1 %v2859_v26 }
 0x5a7   :  { %2307 = vmatprep.subr.mxu1 %v2721_v0 }
 0x5a8   :  { %2308 = vmatpush3.msra.mxu1 %v2865_v27 }
 0x5a9   :  { %2342 = vmatprep.subr.mxu1 %v2721_v0 }
 0x607   :  { %v433_v17 = vpop.permute.xlu0 %432 }
 0x608   :  { %v435_v18 = vsel %vm96_vm2, %v2945_v16, %v433_v17 }
 0x609   :  { %2280 = vmatmul.mubr.msk.f32.vlgmr.msra.gmra.mxu0 %vm206_vm3, %v435_v18 }
 0x60a   :  { %2313 = vmatpush3.msra.mxu0 %v2798_v1  ;;  %2320 = vmatprep.mubr.msk.f32.mxu0 %vm2722_vm0, %v2721_v0 }
 0x60b   :  { %2314 = vmatprep.subr.mxu0 %v2721_v0 }
 0x60c   :  { %2315 = vmatpush3.msra.mxu0 %v2803_v2 }
 0x60d   :  { %2316 = vmatprep.subr.mxu0 %v2721_v0 }
 0x60e   :  { %2317 = vmatpush3.msra.mxu0 %v2810_v3 }
 0x60f   :  { %2318 = vmatprep.subr.mxu0 %v2721_v0 }
 0x610   :  { %2319 = vmatpush3.msra.mxu0 %v2817_v4 }
 0x611   :  { %2323 = vmatprep.subr.mxu0 %v2721_v0 }
 0x659   :  { %v621_v28 = vpop.f32.mrf.mxu1 }
 0x65a   :  { %v625_v29 = vadd.f32 %v621_v28, %v551_v23 }
 0x65b   :  { %v2292_v31 = vpop.f32.mrf.mxu1 }
 0x65c   :  { %2509 = vtanh.f32 %v625_v29  ;;  %v2078_v43 = vmul.f32 -1.442695, %v625_v29 }
 0x669   :  { %v2510_v33 = vpop.eup %2509 }
 0x66a   :  { %639 = vrot.lane.b32.xlu1 %v2510_v33, %s2723_s12 }
 0x66e   :  { %634 = vrot.lane.b32.xlu1 %v2984_v36, %s2716_s14 }
 0x6c9   :  { %v505_v37 = vpop.f32.mrf.mxu0 }
 0x6ca   :  { %v506_v38 = vadd.f32 %v2914_v34, %v505_v37 }
 0x6cb   :  { %v2281_v39 = vpop.f32.mrf.mxu0 }
 0x6cc   :  { %2511 = vtanh.f32 %v506_v38  ;;  %v2076_v42 = vmul.f32 -1.442695, %v506_v38 }
 0x6ce   :  { %2513 = vpow2.f32 %v2076_v42 }
 0x6cf   :  { %2515 = vpow2.f32 %v2078_v43 }
 0x6d9   :  { %v2512_v40 = vpop.eup %2511 }
 0x6da   :  { %522 = vrot.lane.b32.xlu0 %v2512_v40, %s2723_s12 }
 0x6db   :  { %v2514_v44 = vpop.eup %2513 }
 0x6dc   :  { %v512_v45 = vadd.f32 1.0, %v2514_v44  ;;  %v2516_v46 = vpop.eup %2515  ;;  %v640_v51 = vpop.permute.xlu1 %639 }
 0x6dd   :  { %v629_v47 = vadd.f32 1.0, %v2516_v46 }
 0x6de   :  { %517 = vrot.lane.b32.xlu0 %v2992_v41, %s2716_s14  ;;  %2517 = vrcp.f32 %v512_v45 }
 0x6df   :  { %2519 = vrcp.f32 %v629_v47 }
 0x6e0   :  { %v635_v55 = vpop.permute.xlu1 %634 }
 0x6eb   :  { %v2518_v48 = vpop.eup %2517 }
 0x6ec   :  { %v2520_v30 = vpop.eup %2519 }
 0x6ed   :  { %v642_v52 = vmul.f32 %v2520_v30, %v640_v51  ;;  %v637_v58 = vmul.f32 %v2520_v30, %v635_v55 }
 0x74c   :  { %v523_v49 = vpop.permute.xlu0 %522 }
 0x74d   :  { %v525_v50 = vmul.f32 %v2518_v48, %v523_v49 }
 0x74f   :  { %527 = vrot.lane.b32.xlu0 %v525_v50, %s2716_s14 }
 0x750   :  { %v518_v53 = vpop.permute.xlu0 %517 }
 0x751   :  { %v520_v54 = vmul.f32 %v2518_v48, %v518_v53 }
 0x753   :  { %644 = vrot.lane.b32.xlu0 %v642_v52, %s2716_s14 }
 0x7c1   :  { %v528_v56 = vpop.permute.xlu0 %527 }
 0x7c2   :  { %v530_v57 = vadd.f32 %v528_v56, %v520_v54 }
 0x7c4   :  { %2521 = vtanh.f32 %v530_v57 }
 0x7c5   :  { %v645_v59 = vpop.permute.xlu0 %644 }
 0x7c6   :  { %v647_v60 = vadd.f32 %v645_v59, %v637_v58 }
 0x7c8   :  { %2523 = vtanh.f32 %v647_v60 }
 0x7d1   :  { %v2522_v61 = vpop.eup %2521 }
 0x7d2   :  { %533 = vrot.lane.b32.xlu1 %v2522_v61, %s2723_s12 }
 0x7d5   :  { %v2524_v62 = vpop.eup %2523 }
 0x7d6   :  { %650 = vrot.lane.b32.xlu0 %v2524_v62, %s2723_s12 }
 0x844   :  { %v534_v63 = vpop.permute.xlu1 %533 }
 0x845   :  { %v536_v5 = vmul.f32 %v2518_v48, %v534_v63  ;;  %v3077_v63 = vld [vmem:[#allocation5 + $0x6] sm:$0x3] }
 0x846   :  { %vm782_vm6 = vcmp.gt.f32.partialorder %v3077_v63, 0.0 }
 0x847   :  { %538 = vrot.lane.b32.xlu1 %v536_v5, %s2716_s14 }
 0x848   :  { %v651_v6 = vpop.permute.xlu0 %650 }
 0x849   :  { %v653_v7 = vmul.f32 %v2520_v30, %v651_v6 }
 0x84b   :  { %655 = vrot.lane.b32.xlu0 %v653_v7, %s2716_s14 }
 0x84f   :  { %543 = vrot.lane.b32.xlu0 %v530_v57, %s2724_s13 }
 0x853   :  { %660 = vrot.lane.b32.xlu0 %v647_v60, %s2724_s13 }
 0x8b9   :  { %v539_v9 = vpop.permute.xlu1 %538 }
 0x8ba   :  { %v3009_v10 = vsel %vm316_vm4, %v539_v9, %v2937_v14 }
 0x8bb   :  { %665 = vrot.lane.b32.xlu1 %v3009_v10, %s2716_s14 }
 0x8bd   :  { %v656_v11 = vpop.permute.xlu0 %655 }
 0x8be   :  { %v3017_v13 = vsel %vm549_vm5, %v656_v11, %v2945_v16  ;;  %v784_v16 = vld [vmem:[#allocation2 + $0x6] sm:$0x3] }
 0x8bf   :  { %2321 = vmatmul.mubr.msk.f32.vlgmr.msra.gmra.mxu0 %vm96_vm2, %v3017_v13 }
 0x8c0   :  { %2324 = vmatpush3.msra.mxu0 %v2836_v19  ;;  %2339 = vmatprep.mubr.msk.f32.mxu0 %vm2722_vm0, %v2721_v0 }
 0x8c1   :  { %2325 = vmatprep.subr.mxu0 %v2721_v0  ;;  %v544_v28 = vpop.permute.xlu0 %543 }
 0x8c2   :  { %2326 = vmatpush3.msra.mxu0 %v2838_v20  ;;  %v3065_v39 = vsel %vm316_vm4, %v544_v28, %v2992_v41 }
 0x8c3   :  { %2327 = vmatprep.subr.mxu0 %v2721_v0 }
 0x8c4   :  { %2328 = vmatpush3.msra.mxu0 %v2842_v21 }
 0x8c5   :  { %2329 = vmatprep.subr.mxu0 %v2721_v0  ;;  %v661_v31 = vpop.permute.xlu0 %660 }
 0x8c6   :  { %2330 = vmatpush3.msra.mxu0 %v2846_v22  ;;  %v3056_v32 = vsel %vm549_vm5, %v661_v31, %v2984_v36 }
 0x8c7   :  { %2331 = vmatprep.subr.mxu0 %v2721_v0 }
 0x8c8   :  { %2332 = vmatpush3.msra.mxu0 %v2850_v24 }
 0x8c9   :  { %2333 = vmatprep.subr.mxu0 %v2721_v0 }
 0x8ca   :  { %2334 = vmatpush3.msra.mxu0 %v2855_v25 }
 0x8cb   :  { %2335 = vmatprep.subr.mxu0 %v2721_v0 }
 0x8cc   :  { %2336 = vmatpush3.msra.mxu0 %v2859_v26 }
 0x8cd   :  { %2337 = vmatprep.subr.mxu0 %v2721_v0 }
 0x8ce   :  { %2338 = vmatpush3.msra.mxu0 %v2865_v27 }
 0x8cf   :  { %2372 = vmatprep.subr.mxu0 %v2721_v0 }
 0x92d   :  { %v666_v14 = vpop.permute.xlu1 %665 }
 0x92e   :  { %v668_v15 = vsel %vm96_vm2, %v3017_v13, %v666_v14 }
 0x92f   :  { %2310 = vmatmul.mubr.msk.f32.vlgmr.msra.gmra.mxu1 %vm206_vm3, %v668_v15 }
 0x930   :  { %2343 = vmatpush3.msra.mxu1 %v2798_v1  ;;  %2350 = vmatprep.mubr.msk.f32.mxu1 %vm2722_vm0, %v2721_v0 }
 0x931   :  { %2344 = vmatprep.subr.mxu1 %v2721_v0 }
 0x932   :  { %2345 = vmatpush3.msra.mxu1 %v2803_v2 }
 0x933   :  { %2346 = vmatprep.subr.mxu1 %v2721_v0 }
 0x934   :  { %2347 = vmatpush3.msra.mxu1 %v2810_v3 }
 0x935   :  { %2348 = vmatprep.subr.mxu1 %v2721_v0 }
 0x936   :  { %2349 = vmatpush3.msra.mxu1 %v2817_v4 }
 0x937   :  { %2353 = vmatprep.subr.mxu1 %v2721_v0 }
 0x97f   :  { %v854_v17 = vpop.f32.mrf.mxu0 }
 0x980   :  { %v858_v18 = vadd.f32 %v854_v17, %v784_v16 }
 0x981   :  { %v2322_v23 = vpop.f32.mrf.mxu0 }
 0x982   :  { %2525 = vtanh.f32 %v858_v18  ;;  %v2082_v40 = vmul.f32 -1.442695, %v858_v18 }
 0x98f   :  { %v2526_v29 = vpop.eup %2525 }
 0x990   :  { %872 = vrot.lane.b32.xlu0 %v2526_v29, %s2723_s12 }
 0x994   :  { %867 = vrot.lane.b32.xlu0 %v3056_v32, %s2716_s14 }
 0x9ef   :  { %v738_v33 = vpop.f32.mrf.mxu1 }
 0x9f0   :  { %v739_v35 = vadd.f32 %v2914_v34, %v738_v33 }
 0x9f1   :  { %v2311_v37 = vpop.f32.mrf.mxu1 }
 0x9f2   :  { %2527 = vtanh.f32 %v739_v35  ;;  %v2080_v36 = vmul.f32 -1.442695, %v739_v35 }
 0x9f4   :  { %2529 = vpow2.f32 %v2080_v36 }
 0x9f5   :  { %2531 = vpow2.f32 %v2082_v40 }
 0x9ff   :  { %v2528_v38 = vpop.eup %2527 }
 0xa00   :  { %755 = vrot.lane.b32.xlu1 %v2528_v38, %s2723_s12 }
 0xa01   :  { %v2530_v42 = vpop.eup %2529 }
 0xa02   :  { %v745_v43 = vadd.f32 1.0, %v2530_v42  ;;  %v2532_v44 = vpop.eup %2531  ;;  %v873_v49 = vpop.permute.xlu0 %872 }
 0xa03   :  { %v862_v45 = vadd.f32 1.0, %v2532_v44 }
 0xa04   :  { %750 = vrot.lane.b32.xlu1 %v3065_v39, %s2716_s14  ;;  %2533 = vrcp.f32 %v745_v43 }
 0xa05   :  { %2535 = vrcp.f32 %v862_v45 }
 0xa06   :  { %v868_v30 = vpop.permute.xlu0 %867 }
 0xa11   :  { %v2534_v46 = vpop.eup %2533 }
 0xa12   :  { %v2536_v12 = vpop.eup %2535 }
 0xa13   :  { %v875_v41 = vmul.f32 %v2536_v12, %v873_v49  ;;  %v870_v54 = vmul.f32 %v2536_v12, %v868_v30 }
 0xa72   :  { %v756_v47 = vpop.permute.xlu1 %755 }
 0xa73   :  { %v758_v48 = vmul.f32 %v2534_v46, %v756_v47 }
 0xa75   :  { %760 = vrot.lane.b32.xlu1 %v758_v48, %s2716_s14 }
 0xa76   :  { %v751_v50 = vpop.permute.xlu1 %750 }
 0xa77   :  { %v753_v51 = vmul.f32 %v2534_v46, %v751_v50 }
 0xa79   :  { %877 = vrot.lane.b32.xlu1 %v875_v41, %s2716_s14 }
 0xae7   :  { %v761_v52 = vpop.permute.xlu1 %760 }
 0xae8   :  { %v763_v53 = vadd.f32 %v761_v52, %v753_v51 }
 0xaea   :  { %2537 = vtanh.f32 %v763_v53 }
 0xaeb   :  { %v878_v55 = vpop.permute.xlu1 %877 }
 0xaec   :  { %v880_v56 = vadd.f32 %v878_v55, %v870_v54 }
 0xaee   :  { %2539 = vtanh.f32 %v880_v56 }
 0xaf7   :  { %v2538_v57 = vpop.eup %2537 }
 0xaf8   :  { %766 = vrot.lane.b32.xlu0 %v2538_v57, %s2723_s12 }
 0xafb   :  { %v2540_v58 = vpop.eup %2539 }
 0xafc   :  { %883 = vrot.lane.b32.xlu1 %v2540_v58, %s2723_s12 }
 0xb6a   :  { %v767_v59 = vpop.permute.xlu0 %766 }
 0xb6b   :  { %v769_v60 = vmul.f32 %v2534_v46, %v767_v59  ;;  %v3150_v59 = vld [vmem:[#allocation5 + $0x8] sm:$0x3] }
 0xb6c   :  { %vm1015_vm7 = vcmp.gt.f32.partialorder %v3150_v59, 0.0 }
 0xb6d   :  { %771 = vrot.lane.b32.xlu0 %v769_v60, %s2716_s14 }
 0xb6e   :  { %v884_v61 = vpop.permute.xlu1 %883 }
 0xb6f   :  { %v886_v62 = vmul.f32 %v2536_v12, %v884_v61 }
 0xb71   :  { %888 = vrot.lane.b32.xlu1 %v886_v62, %s2716_s14 }
 0xb75   :  { %776 = vrot.lane.b32.xlu1 %v763_v53, %s2724_s13 }
 0xb79   :  { %893 = vrot.lane.b32.xlu1 %v880_v56, %s2724_s13 }
 0xbdf   :  { %v772_v5 = vpop.permute.xlu0 %771 }
 0xbe0   :  { %v3082_v6 = vsel %vm549_vm5, %v772_v5, %v3009_v10 }
 0xbe1   :  { %898 = vrot.lane.b32.xlu0 %v3082_v6, %s2716_s14 }
 0xbe3   :  { %v889_v7 = vpop.permute.xlu1 %888 }
 0xbe4   :  { %v3090_v9 = vsel %vm782_vm6, %v889_v7, %v3017_v13  ;;  %v1017_v13 = vld [vmem:[#allocation2 + $0x8] sm:$0x3] }
 0xbe5   :  { %2351 = vmatmul.mubr.msk.f32.vlgmr.msra.gmra.mxu1 %vm96_vm2, %v3090_v9 }
 0xbe6   :  { %2354 = vmatpush3.msra.mxu1 %v2836_v19  ;;  %2369 = vmatprep.mubr.msk.f32.mxu1 %vm2722_vm0, %v2721_v0 }
 0xbe7   :  { %2355 = vmatprep.subr.mxu1 %v2721_v0  ;;  %v777_v17 = vpop.permute.xlu1 %776 }
 0xbe8   :  { %2356 = vmatpush3.msra.mxu1 %v2838_v20  ;;  %v3138_v37 = vsel %vm549_vm5, %v777_v17, %v3065_v39 }
 0xbe9   :  { %2357 = vmatprep.subr.mxu1 %v2721_v0 }
 0xbea   :  { %2358 = vmatpush3.msra.mxu1 %v2842_v21 }
 0xbeb   :  { %2359 = vmatprep.subr.mxu1 %v2721_v0  ;;  %v894_v23 = vpop.permute.xlu1 %893 }
 0xbec   :  { %2360 = vmatpush3.msra.mxu1 %v2846_v22  ;;  %v3129_v28 = vsel %vm782_vm6, %v894_v23, %v3056_v32 }
 0xbed   :  { %2361 = vmatprep.subr.mxu1 %v2721_v0 }
 0xbee   :  { %2362 = vmatpush3.msra.mxu1 %v2850_v24 }
 0xbef   :  { %2363 = vmatprep.subr.mxu1 %v2721_v0 }
 0xbf0   :  { %2364 = vmatpush3.msra.mxu1 %v2855_v25 }
 0xbf1   :  { %2365 = vmatprep.subr.mxu1 %v2721_v0 }
 0xbf2   :  { %2366 = vmatpush3.msra.mxu1 %v2859_v26 }
 0xbf3   :  { %2367 = vmatprep.subr.mxu1 %v2721_v0 }
 0xbf4   :  { %2368 = vmatpush3.msra.mxu1 %v2865_v27 }
 0xbf5   :  { %2402 = vmatprep.subr.mxu1 %v2721_v0 }
 0xc53   :  { %v899_v10 = vpop.permute.xlu0 %898 }
 0xc54   :  { %v901_v11 = vsel %vm96_vm2, %v3090_v9, %v899_v10 }
 0xc55   :  { %2340 = vmatmul.mubr.msk.f32.vlgmr.msra.gmra.mxu0 %vm206_vm3, %v901_v11 }
 0xc56   :  { %2373 = vmatpush3.msra.mxu0 %v2798_v1  ;;  %2380 = vmatprep.mubr.msk.f32.mxu0 %vm2722_vm0, %v2721_v0 }
 0xc57   :  { %2374 = vmatprep.subr.mxu0 %v2721_v0 }
 0xc58   :  { %2375 = vmatpush3.msra.mxu0 %v2803_v2 }
 0xc59   :  { %2376 = vmatprep.subr.mxu0 %v2721_v0 }
 0xc5a   :  { %2377 = vmatpush3.msra.mxu0 %v2810_v3 }
 0xc5b   :  { %2378 = vmatprep.subr.mxu0 %v2721_v0 }
 0xc5c   :  { %2379 = vmatpush3.msra.mxu0 %v2817_v4 }
 0xc5d   :  { %2383 = vmatprep.subr.mxu0 %v2721_v0 }
 0xca5   :  { %v1087_v14 = vpop.f32.mrf.mxu1 }
 0xca6   :  { %v1091_v15 = vadd.f32 %v1087_v14, %v1017_v13 }
 0xca7   :  { %v2352_v16 = vpop.f32.mrf.mxu1 }
 0xca8   :  { %2541 = vtanh.f32 %v1091_v15  ;;  %v2086_v38 = vmul.f32 -1.442695, %v1091_v15 }
 0xcb5   :  { %v2542_v18 = vpop.eup %2541 }
 0xcb6   :  { %1105 = vrot.lane.b32.xlu1 %v2542_v18, %s2723_s12 }
 0xcba   :  { %1100 = vrot.lane.b32.xlu1 %v3129_v28, %s2716_s14 }
 0xd15   :  { %v971_v29 = vpop.f32.mrf.mxu0 }
 0xd16   :  { %v972_v31 = vadd.f32 %v2914_v34, %v971_v29 }
 0xd17   :  { %v2341_v33 = vpop.f32.mrf.mxu0 }
 0xd18   :  { %2543 = vtanh.f32 %v972_v31  ;;  %v2084_v32 = vmul.f32 -1.442695, %v972_v31 }
 0xd1a   :  { %2545 = vpow2.f32 %v2084_v32 }
 0xd1b   :  { %2547 = vpow2.f32 %v2086_v38 }
 0xd25   :  { %v2544_v35 = vpop.eup %2543 }
 0xd26   :  { %988 = vrot.lane.b32.xlu0 %v2544_v35, %s2723_s12 }
 0xd27   :  { %v2546_v36 = vpop.eup %2545 }
 0xd28   :  { %v978_v40 = vadd.f32 1.0, %v2546_v36  ;;  %v2548_v42 = vpop.eup %2547  ;;  %v1106_v47 = vpop.permute.xlu1 %1105 }
 0xd29   :  { %v1095_v43 = vadd.f32 1.0, %v2548_v42 }
 0xd2a   :  { %983 = vrot.lane.b32.xlu0 %v3138_v37, %s2716_s14  ;;  %2549 = vrcp.f32 %v978_v40 }
 0xd2b   :  { %2551 = vrcp.f32 %v1095_v43 }
 0xd2c   :  { %v1101_v12 = vpop.permute.xlu1 %1100 }
 0xd37   :  { %v2550_v44 = vpop.eup %2549 }
 0xd38   :  { %v2552_v8 = vpop.eup %2551 }
 0xd39   :  { %v1108_v39 = vmul.f32 %v2552_v8, %v1106_v47  ;;  %v1103_v51 = vmul.f32 %v2552_v8, %v1101_v12 }
 0xd98   :  { %v989_v45 = vpop.permute.xlu0 %988 }
 0xd99   :  { %v991_v46 = vmul.f32 %v2550_v44, %v989_v45 }
 0xd9b   :  { %993 = vrot.lane.b32.xlu0 %v991_v46, %s2716_s14 }
 0xd9c   :  { %v984_v48 = vpop.permute.xlu0 %983 }
 0xd9d   :  { %v986_v49 = vmul.f32 %v2550_v44, %v984_v48 }
 0xd9f   :  { %1110 = vrot.lane.b32.xlu0 %v1108_v39, %s2716_s14 }
 0xe0d   :  { %v994_v41 = vpop.permute.xlu0 %993 }
 0xe0e   :  { %v996_v50 = vadd.f32 %v994_v41, %v986_v49  ;;  %v3223_v49 = vld [vmem:[#allocation5 + $0xa] sm:$0x3] }
 0xe0f   :  { %vm1248_vm8 = vcmp.gt.f32.partialorder %v3223_v49, 0.0 }
 0xe10   :  { %2553 = vtanh.f32 %v996_v50 }
 0xe11   :  { %v1111_v30 = vpop.permute.xlu0 %1110 }
 0xe12   :  { %v1113_v52 = vadd.f32 %v1111_v30, %v1103_v51  ;;  %v3240_v30 = vld [vmem:[#allocation7 + $0x38] sm:$0xff] }
 0xe14   :  { %2555 = vtanh.f32 %v1113_v52 }
 0xe1d   :  { %v2554_v53 = vpop.eup %2553 }
 0xe1e   :  { %999 = vrot.lane.b32.xlu1 %v2554_v53, %s2723_s12  ;;  %v3250_v53 = vld [vmem:[#allocation7 + $0x28] sm:$0xff] }
 0xe21   :  { %v2556_v54 = vpop.eup %2555 }
 0xe22   :  { %1116 = vrot.lane.b32.xlu0 %v2556_v54, %s2723_s12  ;;  %v3254_v54 = vld [vmem:[#allocation7 + $0x20] sm:$0xff] }
 0xe90   :  { %v1000_v55 = vpop.permute.xlu1 %999 }
 0xe91   :  { %v1002_v56 = vmul.f32 %v2550_v44, %v1000_v55  ;;  %v3258_v55 = vld [vmem:[#allocation7 + $0x18] sm:$0xff] }
 0xe93   :  { %1004 = vrot.lane.b32.xlu1 %v1002_v56, %s2716_s14 }
 0xe94   :  { %v1117_v57 = vpop.permute.xlu0 %1116 }
 0xe95   :  { %v1119_v58 = vmul.f32 %v2552_v8, %v1117_v57 }
 0xe97   :  { %1121 = vrot.lane.b32.xlu0 %v1119_v58, %s2716_s14  ;;  %v2623_v58 = vld [vmem:[%s3416_s2] sm:$0xff] }
 0xe9b   :  { %1009 = vrot.lane.b32.xlu0 %v996_v50, %s2724_s13 }
 0xe9f   :  { %1126 = vrot.lane.b32.xlu0 %v1113_v52, %s2724_s13  ;;  %v3246_v52 = vld [vmem:[#allocation7 + $0x30] sm:$0xff] }
 0xf05   :  { %v1005_v60 = vpop.permute.xlu1 %1004 }
 0xf06   :  { %v3155_v61 = vsel %vm782_vm6, %v1005_v60, %v3082_v6  ;;  %v1483_v60 = vld [vmem:[#allocation2 + $0xc] sm:$0x3] }
 0xf07   :  { %1131 = vrot.lane.b32.xlu1 %v3155_v61, %s2716_s14 }
 0xf09   :  { %v1122_v62 = vpop.permute.xlu0 %1121 }
 0xf0a   :  { %v3163_v5 = vsel %vm1015_vm7, %v1122_v62, %v3090_v9 }
 0xf0b   :  { %2381 = vmatmul.mubr.msk.f32.vlgmr.msra.gmra.mxu0 %vm96_vm2, %v3163_v5 }
 0xf0c   :  { %2384 = vmatpush3.msra.mxu0 %v2836_v19  ;;  %2399 = vmatprep.mubr.msk.f32.mxu0 %vm2722_vm0, %v2721_v0 }
 0xf0d   :  { %2385 = vmatprep.subr.mxu0 %v2721_v0  ;;  %v1010_v6 = vpop.permute.xlu0 %1009 }
 0xf0e   :  { %2386 = vmatpush3.msra.mxu0 %v2838_v20  ;;  %v3211_v13 = vsel %vm782_vm6, %v1010_v6, %v3138_v37 }
 0xf0f   :  { %2387 = vmatprep.subr.mxu0 %v2721_v0 }
 0xf10   :  { %2388 = vmatpush3.msra.mxu0 %v2842_v21  ;;  %v1250_v21 = vld [vmem:[#allocation2 + $0xa] sm:$0x3] }
 0xf11   :  { %2389 = vmatprep.subr.mxu0 %v2721_v0  ;;  %v1127_v9 = vpop.permute.xlu0 %1126 }
 0xf12   :  { %2390 = vmatpush3.msra.mxu0 %v2846_v22 }
 0xf13   :  { %2391 = vmatprep.subr.mxu0 %v2721_v0 }
 0xf14   :  { %2392 = vmatpush3.msra.mxu0 %v2850_v24 }
 0xf15   :  { %2393 = vmatprep.subr.mxu0 %v2721_v0 }
 0xf16   :  { %2394 = vmatpush3.msra.mxu0 %v2855_v25 }
 0xf17   :  { %2395 = vmatprep.subr.mxu0 %v2721_v0 }
 0xf18   :  { %2396 = vmatpush3.msra.mxu0 %v2859_v26 }
 0xf19   :  { %2397 = vmatprep.subr.mxu0 %v2721_v0 }
 0xf1a   :  { %2398 = vmatpush3.msra.mxu0 %v2865_v27 }
 0xf1b   :  { %2432 = vmatprep.subr.mxu0 %v2721_v0 }
 0xf79   :  { %v1132_v19 = vpop.permute.xlu1 %1131 }
 0xf7a   :  { %v1134_v20 = vsel %vm96_vm2, %v3163_v5, %v1132_v19 }
 0xf7b   :  { %2370 = vmatmul.mubr.msk.f32.vlgmr.msra.gmra.mxu1 %vm206_vm3, %v1134_v20 }
 0xf7c   :  { %2403 = vmatpush3.msra.mxu1 %v2798_v1  ;;  %2410 = vmatprep.mubr.msk.f32.mxu1 %vm2722_vm0, %v2721_v0 }
 0xf7d   :  { %2404 = vmatprep.subr.mxu1 %v2721_v0 }
 0xf7e   :  { %2405 = vmatpush3.msra.mxu1 %v2803_v2  ;;  %v3202_v2 = vsel %vm1015_vm7, %v1127_v9, %v3129_v28 }
 0xf7f   :  { %2406 = vmatprep.subr.mxu1 %v2721_v0 }
 0xf80   :  { %2407 = vmatpush3.msra.mxu1 %v2810_v3 }
 0xf81   :  { %2408 = vmatprep.subr.mxu1 %v2721_v0 }
 0xf82   :  { %2409 = vmatpush3.msra.mxu1 %v2817_v4 }
 0xf83   :  { %2413 = vmatprep.subr.mxu1 %v2721_v0 }
 0xfcb   :  { %v1320_v22 = vpop.f32.mrf.mxu0 }
 0xfcc   :  { %v1324_v1 = vadd.f32 %v1320_v22, %v1250_v21 }
 0xfcd   :  { %v2382_v24 = vpop.f32.mrf.mxu0 }
 0xfce   :  { %2557 = vtanh.f32 %v1324_v1  ;;  %v2090_v15 = vmul.f32 -1.442695, %v1324_v1 }
 0xfdb   :  { %v2558_v7 = vpop.eup %2557 }
 0xfdc   :  { %1338 = vrot.lane.b32.xlu0 %v2558_v7, %s2723_s12 }
 0xfe0   :  { %1333 = vrot.lane.b32.xlu0 %v3202_v2, %s2716_s14 }
0x103b   :  { %v1204_v3 = vpop.f32.mrf.mxu1 }
0x103c   :  { %v1205_v4 = vadd.f32 %v2914_v34, %v1204_v3 }
0x103d   :  { %v2371_v10 = vpop.f32.mrf.mxu1 }
0x103e   :  { %2559 = vtanh.f32 %v1205_v4  ;;  %v2088_v14 = vmul.f32 -1.442695, %v1205_v4 }
0x1040   :  { %2561 = vpow2.f32 %v2088_v14 }
0x1041   :  { %2563 = vpow2.f32 %v2090_v15 }
0x104b   :  { %v2560_v11 = vpop.eup %2559 }
0x104c   :  { %1221 = vrot.lane.b32.xlu1 %v2560_v11, %s2723_s12 }
0x104d   :  { %v2562_v16 = vpop.eup %2561 }
0x104e   :  { %v1211_v17 = vadd.f32 1.0, %v2562_v16  ;;  %v2564_v18 = vpop.eup %2563  ;;  %v1339_v33 = vpop.permute.xlu0 %1338 }
0x104f   :  { %v1328_v23 = vadd.f32 1.0, %v2564_v18 }
0x1050   :  { %1216 = vrot.lane.b32.xlu1 %v3211_v13, %s2716_s14  ;;  %2565 = vrcp.f32 %v1211_v17 }
0x1051   :  { %2567 = vrcp.f32 %v1328_v23 }
0x1052   :  { %v1334_v38 = vpop.permute.xlu0 %1333 }
0x105d   :  { %v2566_v28 = vpop.eup %2565 }
0x105e   :  { %v2568_v63 = vpop.eup %2567 }
0x105f   :  { %v1341_v35 = vmul.f32 %v2568_v63, %v1339_v33  ;;  %v1336_v42 = vmul.f32 %v2568_v63, %v1334_v38 }
0x10be   :  { %v1222_v29 = vpop.permute.xlu1 %1221 }
0x10bf   :  { %v1224_v31 = vmul.f32 %v2566_v28, %v1222_v29 }
0x10c1   :  { %1226 = vrot.lane.b32.xlu1 %v1224_v31, %s2716_s14 }
0x10c2   :  { %v1217_v37 = vpop.permute.xlu1 %1216 }
0x10c3   :  { %v1219_v32 = vmul.f32 %v2566_v28, %v1217_v37 }
0x10c5   :  { %1343 = vrot.lane.b32.xlu1 %v1341_v35, %s2716_s14 }
0x1133   :  { %v1227_v36 = vpop.permute.xlu1 %1226 }
0x1134   :  { %v1229_v40 = vadd.f32 %v1227_v36, %v1219_v32 }
0x1136   :  { %2569 = vtanh.f32 %v1229_v40 }
0x1137   :  { %v1344_v43 = vpop.permute.xlu1 %1343 }
0x1138   :  { %v1346_v44 = vadd.f32 %v1344_v43, %v1336_v42  ;;  %v3314_v43 = vld [vmem:[#allocation5 + $0xc] sm:$0x3] }
0x1139   :  { %vm1481_vm9 = vcmp.gt.f32.partialorder %v3314_v43, 0.0 }
0x113a   :  { %2571 = vtanh.f32 %v1346_v44 }
0x1143   :  { %v2570_v45 = vpop.eup %2569 }
0x1144   :  { %1232 = vrot.lane.b32.xlu0 %v2570_v45, %s2723_s12 }
0x1147   :  { %v2572_v46 = vpop.eup %2571 }
0x1148   :  { %1349 = vrot.lane.b32.xlu1 %v2572_v46, %s2723_s12 }
0x11b6   :  { %v1233_v47 = vpop.permute.xlu0 %1232 }
0x11b7   :  { %v1235_v8 = vmul.f32 %v2566_v28, %v1233_v47 }
0x11b9   :  { %1237 = vrot.lane.b32.xlu0 %v1235_v8, %s2716_s14  ;;  %v2624_v8 = vld [vmem:[#allocation7 + $0x10] sm:$0xff] }
0x11ba   :  { %v1350_v39 = vpop.permute.xlu1 %1349 }
0x11bb   :  { %v1352_v48 = vmul.f32 %v2568_v63, %v1350_v39  ;;  %v2625_v39 = vld [vmem:[#allocation7 + $0x8] sm:$0xff] }
0x11bd   :  { %1354 = vrot.lane.b32.xlu1 %v1352_v48, %s2716_s14  ;;  %v2626_v48 = vld [vmem:[#allocation7] sm:$0xff] }
0x11c1   :  { %1242 = vrot.lane.b32.xlu1 %v1229_v40, %s2724_s13 }
0x11c5   :  { %1359 = vrot.lane.b32.xlu1 %v1346_v44, %s2724_s13 }
0x122b   :  { %v1238_v12 = vpop.permute.xlu0 %1237 }
0x122c   :  { %v3228_v41 = vsel %vm1015_vm7, %v1238_v12, %v3155_v61 }
0x122d   :  { %1364 = vrot.lane.b32.xlu0 %v3228_v41, %s2716_s14 }
0x122f   :  { %v1355_v50 = vpop.permute.xlu1 %1354 }
0x1230   :  { %v3236_v51 = vsel %vm1248_vm8, %v1355_v50, %v3163_v5  ;;  %v1716_v50 = vld [vmem:[#allocation2 + $0xe] sm:$0x3] }
0x1231   :  { %2411 = vmatmul.mubr.msk.f32.vlgmr.msra.gmra.mxu1 %vm96_vm2, %v3236_v51 }
0x1232   :  { %2414 = vmatpush3.msra.mxu1 %v3240_v30  ;;  %2429 = vmatprep.mubr.msk.f32.mxu1 %vm2722_vm0, %v2721_v0 }
0x1233   :  { %2415 = vmatprep.subr.mxu1 %v2721_v0  ;;  %v1243_v19 = vpop.permute.xlu1 %1242 }
0x1234   :  { %2416 = vmatpush3.msra.mxu1 %v3246_v52  ;;  %v3302_v9 = vsel %vm1015_vm7, %v1243_v19, %v3211_v13 }
0x1235   :  { %2417 = vmatprep.subr.mxu1 %v2721_v0 }
0x1236   :  { %2418 = vmatpush3.msra.mxu1 %v3250_v53 }
0x1237   :  { %2419 = vmatprep.subr.mxu1 %v2721_v0  ;;  %v1360_v21 = vpop.permute.xlu1 %1359 }
0x1238   :  { %2420 = vmatpush3.msra.mxu1 %v3254_v54  ;;  %v3293_v22 = vsel %vm1248_vm8, %v1360_v21, %v3202_v2 }
0x1239   :  { %2421 = vmatprep.subr.mxu1 %v2721_v0 }
0x123a   :  { %2422 = vmatpush3.msra.mxu1 %v3258_v55 }
0x123b   :  { %2423 = vmatprep.subr.mxu1 %v2721_v0 }
0x123c   :  { %2424 = vmatpush3.msra.mxu1 %v2855_v25  ;;  %v2620_v25 = vld [vmem:[%s3416_s2 + $0x18] sm:$0xff] }
0x123d   :  { %2425 = vmatprep.subr.mxu1 %v2721_v0 }
0x123e   :  { %2426 = vmatpush3.msra.mxu1 %v2859_v26  ;;  %v2621_v26 = vld [vmem:[%s3416_s2 + $0x10] sm:$0xff] }
0x123f   :  { %2427 = vmatprep.subr.mxu1 %v2721_v0 }
0x1240   :  { %2428 = vmatpush3.msra.mxu1 %v2865_v27  ;;  %v2622_v27 = vld [vmem:[%s3416_s2 + $0x8] sm:$0xff] }
0x1241   :  { %2462 = vmatprep.subr.mxu1 %v2721_v0 }
0x129f   :  { %v1365_v56 = vpop.permute.xlu0 %1364 }
0x12a0   :  { %v1367_v57 = vsel %vm96_vm2, %v3236_v51, %v1365_v56 }
0x12a1   :  { %2400 = vmatmul.mubr.msk.f32.vlgmr.msra.gmra.mxu0 %vm206_vm3, %v1367_v57 }
0x12a2   :  { %2433 = vmatpush3.msra.mxu0 %v2620_v25  ;;  %2440 = vmatprep.mubr.msk.f32.mxu0 %vm2722_vm0, %v2721_v0  ;;  %v2627_v25 = vld [vmem:[%s3418_s4] ss:$0 sm:$0xff] }
0x12a3   :  { %2434 = vmatprep.subr.mxu0 %v2721_v0 }
0x12a4   :  { %2435 = vmatpush3.msra.mxu0 %v2621_v26 }
0x12a5   :  { %2436 = vmatprep.subr.mxu0 %v2721_v0 }
0x12a6   :  { %2437 = vmatpush3.msra.mxu0 %v2622_v27 }
0x12a7   :  { %2438 = vmatprep.subr.mxu0 %v2721_v0 }
0x12a8   :  { %2439 = vmatpush3.msra.mxu0 %v2623_v58 }
0x12a9   :  { %2443 = vmatprep.subr.mxu0 %v2721_v0 }
0x12f1   :  { %v1553_v61 = vpop.f32.mrf.mxu1 }
0x12f2   :  { %v1557_v62 = vadd.f32 %v1553_v61, %v1483_v60 }
0x12f3   :  { %v2412_v5 = vpop.f32.mrf.mxu1 }
0x12f4   :  { %2573 = vtanh.f32 %v1557_v62  ;;  %v2094_v3 = vmul.f32 -1.442695, %v1557_v62 }
0x1301   :  { %v2574_v20 = vpop.eup %2573 }
0x1302   :  { %1571 = vrot.lane.b32.xlu1 %v2574_v20, %s2723_s12 }
0x1306   :  { %1566 = vrot.lane.b32.xlu1 %v3293_v22, %s2716_s14 }
0x1361   :  { %v1437_v1 = vpop.f32.mrf.mxu0 }
0x1362   :  { %v1438_v24 = vadd.f32 %v2914_v34, %v1437_v1 }
0x1363   :  { %v2401_v6 = vpop.f32.mrf.mxu0 }
0x1364   :  { %2575 = vtanh.f32 %v1438_v24  ;;  %v2092_v2 = vmul.f32 -1.442695, %v1438_v24 }
0x1366   :  { %2577 = vpow2.f32 %v2092_v2 }
0x1367   :  { %2579 = vpow2.f32 %v2094_v3 }
0x1371   :  { %v2576_v7 = vpop.eup %2575 }
0x1372   :  { %1454 = vrot.lane.b32.xlu0 %v2576_v7, %s2723_s12 }
0x1373   :  { %v2578_v4 = vpop.eup %2577 }
0x1374   :  { %v1444_v10 = vadd.f32 1.0, %v2578_v4  ;;  %v2580_v34 = vpop.eup %2579  ;;  %v1572_v17 = vpop.permute.xlu1 %1571 }
0x1375   :  { %v1561_v11 = vadd.f32 1.0, %v2580_v34 }
0x1376   :  { %1449 = vrot.lane.b32.xlu0 %v3302_v9, %s2716_s14  ;;  %2581 = vrcp.f32 %v1444_v10 }
0x1377   :  { %2583 = vrcp.f32 %v1561_v11 }
0x1378   :  { %v1567_v28 = vpop.permute.xlu1 %1566 }
0x1383   :  { %v2582_v14 = vpop.eup %2581 }
0x1384   :  { %v2584_v59 = vpop.eup %2583 }
0x1385   :  { %v1574_v13 = vmul.f32 %v2584_v59, %v1572_v17  ;;  %v1569_v33 = vmul.f32 %v2584_v59, %v1567_v28 }
0x13e4   :  { %v1455_v15 = vpop.permute.xlu0 %1454 }
0x13e5   :  { %v1457_v16 = vmul.f32 %v2582_v14, %v1455_v15 }
0x13e7   :  { %1459 = vrot.lane.b32.xlu0 %v1457_v16, %s2716_s14 }
0x13e8   :  { %v1450_v18 = vpop.permute.xlu0 %1449 }
0x13e9   :  { %v1452_v23 = vmul.f32 %v2582_v14, %v1450_v18 }
0x13eb   :  { %1576 = vrot.lane.b32.xlu0 %v1574_v13, %s2716_s14 }
0x1459   :  { %v1460_v29 = vpop.permute.xlu0 %1459 }
0x145a   :  { %v1462_v31 = vadd.f32 %v1460_v29, %v1452_v23 }
0x145c   :  { %2585 = vtanh.f32 %v1462_v31 }
0x145d   :  { %v1577_v63 = vpop.permute.xlu0 %1576 }
0x145e   :  { %v1579_v35 = vadd.f32 %v1577_v63, %v1569_v33  ;;  %v1713_v63 = vld [vmem:[#allocation5 + $0xe] sm:$0x3] }
0x145f   :  { %vm1714_vm10 = vcmp.gt.f32.partialorder %v1713_v63, 0.0 }
0x1460   :  { %2587 = vtanh.f32 %v1579_v35 }
0x1469   :  { %v2586_v37 = vpop.eup %2585 }
0x146a   :  { %1465 = vrot.lane.b32.xlu1 %v2586_v37, %s2723_s12 }
0x146d   :  { %v2588_v32 = vpop.eup %2587 }
0x146e   :  { %1582 = vrot.lane.b32.xlu0 %v2588_v32, %s2723_s12 }
0x14dc   :  { %v1466_v38 = vpop.permute.xlu1 %1465 }
0x14dd   :  { %v1468_v36 = vmul.f32 %v2582_v14, %v1466_v38 }
0x14df   :  { %1470 = vrot.lane.b32.xlu1 %v1468_v36, %s2716_s14 }
0x14e0   :  { %v1583_v40 = vpop.permute.xlu0 %1582 }
0x14e1   :  { %v1585_v42 = vmul.f32 %v2584_v59, %v1583_v40 }
0x14e3   :  { %1587 = vrot.lane.b32.xlu0 %v1585_v42, %s2716_s14 }
0x14e7   :  { %1475 = vrot.lane.b32.xlu0 %v1462_v31, %s2724_s13 }
0x14eb   :  { %1592 = vrot.lane.b32.xlu0 %v1579_v35, %s2724_s13 }
0x1551   :  { %v1471_v44 = vpop.permute.xlu1 %1470 }
0x1552   :  { %v3319_v45 = vsel %vm1248_vm8, %v1471_v44, %v3228_v41 }
0x1553   :  { %1597 = vrot.lane.b32.xlu1 %v3319_v45, %s2716_s14 }
0x1555   :  { %v1588_v46 = vpop.permute.xlu0 %1587 }
0x1556   :  { %v3327_v47 = vsel %vm1481_vm9, %v1588_v46, %v3236_v51 }
0x1557   :  { %2441 = vmatmul.mubr.msk.f32.vlgmr.msra.gmra.mxu0 %vm96_vm2, %v3327_v47 }
0x1558   :  { %2444 = vmatpush3.msra.mxu0 %v3240_v30  ;;  %2459 = vmatprep.mubr.msk.f32.mxu0 %vm2722_vm0, %v2721_v0 }
0x1559   :  { %2445 = vmatprep.subr.mxu0 %v2721_v0 }
0x155a   :  { %2446 = vmatpush3.msra.mxu0 %v3246_v52 }
0x155b   :  { %2447 = vmatprep.subr.mxu0 %v2721_v0 }
0x155c   :  { %2448 = vmatpush3.msra.mxu0 %v3250_v53  ;;  %v1476_v53 = vpop.permute.xlu0 %1475 }
0x155d   :  { %2449 = vmatprep.subr.mxu0 %v2721_v0  ;;  %v1478_v60 = vsel %vm1248_vm8, %v1476_v53, %v3302_v9 }
0x155e   :  { %2450 = vmatpush3.msra.mxu0 %v3254_v54 }
0x155f   :  { %2451 = vmatprep.subr.mxu0 %v2721_v0 }
0x1560   :  { %2452 = vmatpush3.msra.mxu0 %v3258_v55  ;;  %v1593_v55 = vpop.permute.xlu0 %1592 }
0x1561   :  { %2453 = vmatprep.subr.mxu0 %v2721_v0  ;;  %v1595_v56 = vsel %vm1481_vm9, %v1593_v55, %v3293_v22 }
0x1562   :  { %2454 = vmatpush3.msra.mxu0 %v2624_v8 }
0x1563   :  { %2455 = vmatprep.subr.mxu0 %v2721_v0 }
0x1564   :  { %2456 = vmatpush3.msra.mxu0 %v2625_v39 }
0x1565   :  { %2457 = vmatprep.subr.mxu0 %v2721_v0 }
0x1566   :  { %2458 = vmatpush3.msra.mxu0 %v2626_v48 }
0x15c5   :  { %v1598_v12 = vpop.permute.xlu1 %1597 }
0x15c6   :  { %v1600_v41 = vsel %vm96_vm2, %v3327_v47, %v1598_v12 }
0x15c7   :  { %2430 = vmatmul.mubr.msk.f32.vlgmr.msra.gmra.mxu1 %vm206_vm3, %v1600_v41 }
0x15c8   :  { %2470 = vmatprep.mubr.msk.f32.mxu1 %vm2722_vm0, %v2721_v0 }
0x1617   :  { %v1786_v51 = vpop.f32.mrf.mxu0 }
0x1618   :  { %v1790_v30 = vadd.f32 %v1786_v51, %v1716_v50 }
0x1619   :  { %v2442_v52 = vpop.f32.mrf.mxu0 }
0x161a   :  { %2589 = vtanh.f32 %v1790_v30  ;;  %v2098_v62 = vmul.f32 -1.442695, %v1790_v30 }
0x1627   :  { %v2590_v54 = vpop.eup %2589 }
0x1628   :  { %1804 = vrot.lane.b32.xlu0 %v2590_v54, %s2723_s12 }
0x162c   :  { %1799 = vrot.lane.b32.xlu0 %v1595_v56, %s2716_s14 }
0x1687   :  { %v1670_v57 = vpop.f32.mrf.mxu1 }
0x1688   :  { %v1671_v26 = vadd.f32 %v2627_v25, %v1670_v57 }
0x1689   :  { %v2431_v27 = vpop.f32.mrf.mxu1 }
0x168a   :  { %2591 = vtanh.f32 %v1671_v26  ;;  %v2096_v61 = vmul.f32 -1.442695, %v1671_v26  ;;  %v1970_v27 = vld [vmem:[%s3421_s7 + $0x18] sm:$0xff] }
0x168b   :  { %2463 = vmatpush3.msra.mxu1 %v1970_v27 }
0x168c   :  { %2593 = vpow2.f32 %v2096_v61  ;;  %2464 = vmatprep.subr.mxu1 %v2721_v0  ;;  %v1967_v61 = vld [vmem:[%s3421_s7] sm:$0xff] }
0x168d   :  { %2595 = vpow2.f32 %v2098_v62 }
0x1697   :  { %v2592_v58 = vpop.eup %2591 }
0x1698   :  { %1687 = vrot.lane.b32.xlu1 %v2592_v58, %s2723_s12  ;;  %v1969_v58 = vld [vmem:[%s3421_s7 + $0x10] sm:$0xff] }
0x1699   :  { %v2594_v5 = vpop.eup %2593  ;;  %2465 = vmatpush3.msra.mxu1 %v1969_v58 }
0x169a   :  { %v1677_v19 = vadd.f32 1.0, %v2594_v5  ;;  %v2596_v20 = vpop.eup %2595  ;;  %v1805_v6 = vpop.permute.xlu0 %1804  ;;  %2466 = vmatprep.subr.mxu1 %v2721_v0 }
0x169b   :  { %v1794_v21 = vadd.f32 1.0, %v2596_v20 }
0x169c   :  { %1682 = vrot.lane.b32.xlu1 %v1478_v60, %s2716_s14  ;;  %2597 = vrcp.f32 %v1677_v19 }
0x169d   :  { %2599 = vrcp.f32 %v1794_v21  ;;  %v2101_v21 = vld [vmem:[%s3419_s5] ss:$0 sm:$0xff] }
0x169e   :  { %v1800_v3 = vpop.permute.xlu0 %1799 }
0x16a9   :  { %v2598_v22 = vpop.eup %2597 }
0x16aa   :  { %v2600_v49 = vpop.eup %2599 }
0x16ab   :  { %v1807_v7 = vmul.f32 %v2600_v49, %v1805_v6  ;;  %v1802_v34 = vmul.f32 %v2600_v49, %v1800_v3 }
0x170a   :  { %v1688_v1 = vpop.permute.xlu1 %1687 }
0x170b   :  { %v1690_v24 = vmul.f32 %v2598_v22, %v1688_v1  ;;  %v2102_v1 = vld [vmem:[%s3420_s6] ss:$0 sm:$0xff] }
0x170d   :  { %1692 = vrot.lane.b32.xlu1 %v1690_v24, %s2716_s14 }
0x170e   :  { %v1683_v9 = vpop.permute.xlu1 %1682 }
0x170f   :  { %v1685_v2 = vmul.f32 %v2598_v22, %v1683_v9 }
0x1711   :  { %1809 = vrot.lane.b32.xlu1 %v1807_v7, %s2716_s14 }
0x177f   :  { %v1693_v4 = vpop.permute.xlu1 %1692 }
0x1780   :  { %v1695_v10 = vadd.f32 %v1693_v4, %v1685_v2 }
0x1782   :  { %2601 = vtanh.f32 %v1695_v10 }
0x1783   :  { %v1810_v11 = vpop.permute.xlu1 %1809 }
0x1784   :  { %v1812_v14 = vadd.f32 %v1810_v11, %v1802_v34 }
0x1786   :  { %2603 = vtanh.f32 %v1812_v14 }
0x178f   :  { %v2602_v15 = vpop.eup %2601 }
0x1790   :  { %1698 = vrot.lane.b32.xlu0 %v2602_v15, %s2723_s12 }
0x1793   :  { %v2604_v16 = vpop.eup %2603 }
0x1794   :  { %1815 = vrot.lane.b32.xlu1 %v2604_v16, %s2723_s12 }
0x1802   :  { %v1699_v17 = vpop.permute.xlu0 %1698 }
0x1803   :  { %v1701_v59 = vmul.f32 %v2598_v22, %v1699_v17 }
0x1805   :  { %1703 = vrot.lane.b32.xlu0 %v1701_v59, %s2716_s14 }
0x1806   :  { %v1816_v13 = vpop.permute.xlu1 %1815 }
0x1807   :  { %v1818_v18 = vmul.f32 %v2600_v49, %v1816_v13 }
0x1809   :  { %1820 = vrot.lane.b32.xlu1 %v1818_v18, %s2716_s14 }
0x180d   :  { %1708 = vrot.lane.b32.xlu1 %v1695_v10, %s2724_s13  ;;  %s2725_s13 = smov [#allocation8]  }
0x180e   :  { %s2059_s15 = sshll.u32 %s2725_s13, 4  ;;  %s2060_s15 = int_to_ptr.vmem [resolvable:$true] %s2059_s15 }
0x180f   :  { %s2688_s5 = scalar_lea.vmem %s2060_s15, 32  ;;  %p2693_p2 = scmp.lt.s32.totalorder %s2060_s15, %s2060_s15 }
0x1810   :  { %p2689_p1 = scmp.ne.s32.totalorder %s2060_s15, %s2688_s5  ;;  %p2694_p3 = scmp.lt.s32.totalorder %s2688_s5, %s2688_s5 }
0x1812   :  { %p2695_p4 = por %p2694_p3, %p2693_p2 }
0x1814   :  { %p2696_p5 = pnand %p2695_p4, %p2689_p1 }
0x1877   :  { %v1704_v23 = vpop.permute.xlu0 %1703 }
0x1878   :  { %v1706_v28 = vsel %vm1481_vm9, %v1704_v23, %v3319_v45 }
0x1879   :  { %1825 = vrot.lane.b32.xlu0 %v1706_v28, %s2716_s14 }
0x187b   :  { %v1821_v29 = vpop.permute.xlu1 %1820 }
0x187c   :  { %v1823_v35 = vsel %vm1714_vm10, %v1821_v29, %v3327_v47 }
0x187f   :  { %v1709_v31 = vpop.permute.xlu1 %1708 }
0x1880   :  { %v1711_v33 = vsel %vm1481_vm9, %v1709_v31, %v1478_v60  ;;  %v1968_v60 = vld [vmem:[%s3421_s7 + $0x8] sm:$0xff] }
0x1881   :  { %1910 = vrot.lane.b32.xlu1 %v1711_v33, %s2716_s14  ;;  %2467 = vmatpush3.msra.mxu1 %v1968_v60 }
0x1882   :  { %2468 = vmatprep.subr.mxu1 %v2721_v0  ;;  %v2103_v0 = vld [vmem:[%s3422_s8] ss:$0 sm:$0xff] }
0x1883   :  { %2469 = vmatpush3.msra.mxu1 %v1967_v61 }
0x18eb   :  { %v1826_v37 = vpop.permute.xlu0 %1825 }
0x18ec   :  { %v1828_v32 = vsel %vm96_vm2, %v1823_v35, %v1826_v37 }
0x18ed   :  { %2460 = vmatmul.mubr.msk.f32.vlgmr.msra.gmra.mxu0 %vm206_vm3, %v1828_v32 }
0x18f3   :  { %v1911_v39 = vpop.permute.xlu1 %1910 }
0x19ad   :  { %v1898_v38 = vpop.f32.mrf.mxu0 }
0x19ae   :  { %v1899_v36 = vadd.f32 %v2627_v25, %v1898_v38 }
0x19af   :  { %v2461_v40 = vpop.f32.mrf.mxu0 }
0x19b0   :  { %2605 = vtanh.f32 %v1899_v36  ;;  %v2100_v43 = vmul.f32 -1.442695, %v1899_v36 }
0x19b2   :  { %2607 = vpow2.f32 %v2100_v43 }
0x19bd   :  { %v2606_v42 = vpop.eup %2605 }
0x19be   :  { %1915 = vrot.lane.b32.xlu0 %v2606_v42, %s2723_s12 }
0x19bf   :  { %v2608_v44 = vpop.eup %2607 }
0x19c0   :  { %v1905_v45 = vadd.f32 1.0, %v2608_v44 }
0x19c2   :  { %2609 = vrcp.f32 %v1905_v45 }
0x19cf   :  { %v2610_v46 = vpop.eup %2609 }
0x19d0   :  { %v1913_v48 = vmul.f32 %v2610_v46, %v1911_v39 }
0x1a30   :  { %v1916_v8 = vpop.permute.xlu0 %1915 }
0x1a31   :  { %v1918_v47 = vmul.f32 %v2610_v46, %v1916_v8 }
0x1a33   :  { %1920 = vrot.lane.b32.xlu0 %v1918_v47, %s2716_s14 }
0x1aa5   :  { %v1921_v12 = vpop.permute.xlu0 %1920 }
0x1aa6   :  { %v1923_v41 = vadd.f32 %v1921_v12, %v1913_v48 }
0x1aa8   :  { %2611 = vtanh.f32 %v1923_v41 }
0x1ab5   :  { %v2612_v50 = vpop.eup %2611 }
0x1ab6   :  { %1926 = vrot.lane.b32.xlu1 %v2612_v50, %s2723_s12 }
0x1b28   :  { %v1927_v51 = vpop.permute.xlu1 %1926 }
0x1b29   :  { %v1929_v30 = vmul.f32 %v2610_v46, %v1927_v51 }
0x1b2b   :  { %1931 = vrot.lane.b32.xlu0 %v1929_v30, %s2716_s14 }
0x1b9d   :  { %v1932_v52 = vpop.permute.xlu0 %1931 }
0x1b9e   :  { %v1934_v53 = vsel %vm1714_vm10, %v1932_v52, %v1706_v28 }
0x1b9f   :  { %v1936_v54 = vsel %vm1935_vm11, %v1934_v53, 0.0 }
0x1ba0   :  { %1937 = vadd.xlane.f32.xlu1 %v1936_v54 }
0x1c29   :  { %v1938_v55 = vpop.xlane.xlu1 %1937 }
0x1c2a   :  { %v1940_v56 = vmul.f32 0.03125, %v1938_v55 }
0x1c2c   :  { %v1941_v57 = vsub.f32 %v1934_v53, %v1940_v56 }
0x1c2e   :  { %v1942_v25 = vmul.f32 %v1941_v57, %v1941_v57 }
0x1c30   :  { %v1943_v26 = vsel %vm1935_vm11, %v1942_v25, 0.0 }
0x1c31   :  { %1944 = vadd.xlane.f32.xlu0 %v1943_v26 }
0x1cba   :  { %v1945_v62 = vpop.xlane.xlu0 %1944 }
0x1cbb   :  { %v1946_v5 = vmul.f32 0.03125, %v1945_v62 }
0x1cbd   :  { %v1947_v19 = vadd.f32 1e-05, %v1946_v5 }
0x1cbf   :  { %2613 = vrsqrt.f32 %v1947_v19 }
0x1ccc   :  { %v2614_v20 = vpop.eup %2613 }
0x1ccd   :  { %v1949_v22 = vmul.f32 %v2614_v20, %v1941_v57 }
0x1ccf   :  { %v1957_v24 = vmul.f32 %v2101_v21, %v1949_v22 }
0x1cd1   :  { %v1965_v6 = vadd.f32 %v2102_v1, %v1957_v24 }
0x1cd3   :  { %v1966_v49 = vmax.f32 %v1965_v6, 0.0 }
0x1cd5   :  { %2471 = vmatmul.mubr.msk.f32.vlgmr.msra.gmra.mxu1 %vm96_vm2, %v1966_v49 }
0x1d95   :  { %v2047_v7 = vpop.f32.mrf.mxu1 }
0x1d96   :  { %v2048_v9 = vadd.f32 %v2103_v0, %v2047_v7 }
0x1d97   :  { %v2472_v2 = vpop.f32.mrf.mxu1 }
0x1d98   :  { %2052 = vst.msk [vmem:[#allocation8] sm:$0x3] %vm2051_vm12, %v2048_v9 }
0x1d99   :  { %2699 = shalt.err (!%p2696_p5)
}
0x1d9a   :  { %2062 = dma.vmem_to_hbm [thread:$0]  %s2060_s15, 32, %s3423_s9, [#allocation4]  }
0x1d9b   :  { %2712 = dma.done.wait [#allocation4], 32  }
0x1d9c   :  { %2713 = vsyncadd [#allocation4], 4294967264 }
0x1d9d   :  { %2066 = vsyncpa [#allocation3], 1 }
0x1d9e   :  { %2067 = vsyncpa [#allocation6], 1 }
0x1d9f   :  { %2068 = vsyncpa [#allocation4], 1 }

</bundles_post_ra>
